<compile_context>
chip_gen: v6e
topology: v6e:2x2x1
jax: 0.10.0
libtpu: 0.0.40
codegen_flags: <defaults>
</compile_context>

<pallas_src>
import math
import functools

import jax
import jax.numpy as jnp
from jax.experimental import pallas as pl
from jax.experimental.pallas import tpu as pltpu

EPS = 1e-5  # c.model_layer_norm_eps

ATTN_PARAMS = ["ln0_g", "ln0_b", "wq", "bq", "wres", "bres", "wmix", "bmix"]
RFF_PARAMS = ["ln1_g", "ln1_b", "w1", "b1", "w2", "b2"]


def _layer_norm(v, g, b):
    mu = jnp.mean(v, axis=-1, keepdims=True)
    var = jnp.mean(jnp.square(v - mu), axis=-1, keepdims=True)
    return (v - mu) * jax.lax.rsqrt(var + EPS) * g + b


# --------------------------------------------------------------------------
# Kernel 1: pre-LN, Q / residual projection, flash attention, head mixing.
# Grid: (B, N_tiles, M_tiles); M (KV) axis is the innermost "arbitrary" axis.
# --------------------------------------------------------------------------
def attn_kernel(x_ref, k_ref, v_ref,
                ln0_g_ref, ln0_b_ref, wq_ref, bq_ref,
                wres_ref, bres_ref, wmix_ref, bmix_ref,
                h_ref,
                q_sc, xres_sc, m_sc, l_sc, acc_sc,
                *, num_heads, ds, scale, kv_valid, tile_m, mask_kv):
    m_idx = pl.program_id(2)

    # ---- per-(b, n)-tile init: only on the first KV tile --------------------
    @pl.when(m_idx == 0)
    def _init():
        x = x_ref[0]                                        # (TN, dim_Q) f32
        x_ln = _layer_norm(x, ln0_g_ref[...], ln0_b_ref[...])
        # one full-width MXU dot for all heads; fold 1/sqrt(dim_KV) once
        q = jnp.dot(x_ln.astype(jnp.bfloat16), wq_ref[...],
                    preferred_element_type=jnp.float32) + bq_ref[...]
        q_sc[...] = q * scale
        # separate residual embedding (fc_res) on the raw (un-normed) X
        xres_sc[...] = jnp.dot(x.astype(jnp.bfloat16), wres_ref[...],
                               preferred_element_type=jnp.float32) + bres_ref[...]
        m_sc[...] = jnp.full_like(m_sc, -jnp.inf)
        l_sc[...] = jnp.zeros_like(l_sc)
        acc_sc[...] = jnp.zeros_like(acc_sc)

    # ---- online-softmax attention over this (pre-projected) KV tile ---------
    k = k_ref[0]                                            # (TM, dim_emb) bf16
    v = v_ref[0]                                            # (TM, dim_emb) bf16
    if mask_kv:   # static: only emitted when M was padded to a tile multiple
        col_ids = m_idx * tile_m + jax.lax.broadcasted_iota(
            jnp.int32, (1, tile_m), 1)
        col_ok = col_ids < kv_valid

    for h in range(num_heads):                              # static unroll
        sl = slice(h * ds, (h + 1) * ds)
        qh = q_sc[:, sl].astype(jnp.bfloat16)               # (TN, ds)
        s = jax.lax.dot_general(
            qh, k[:, sl],
            dimension_numbers=(((1,), (1,)), ((), ())),
            preferred_element_type=jnp.float32)             # (TN, TM)
        if mask_kv:
            s = jnp.where(col_ok, s, -1e30)
        m_prev = m_sc[:, h:h + 1]                           # (TN, 1)
        m_new = jnp.maximum(m_prev, jnp.max(s, axis=-1, keepdims=True))
        alpha = jnp.exp(m_prev - m_new)
        p = jnp.exp(s - m_new)
        l_sc[:, h:h + 1] = alpha * l_sc[:, h:h + 1] + jnp.sum(
            p, axis=-1, keepdims=True)
        acc_sc[:, sl] = alpha * acc_sc[:, sl] + jnp.dot(
            p.astype(jnp.bfloat16), v[:, sl],
            preferred_element_type=jnp.float32)
        m_sc[:, h:h + 1] = m_new

    # ---- finalize: normalize, mix heads, add residual; last KV tile only ----
    @pl.when(m_idx == pl.num_programs(2) - 1)
    def _finalize():
        inv = pl.reciprocal(l_sc[...], approx=True)         # EUP, not VPU divide
        for h in range(num_heads):
            sl = slice(h * ds, (h + 1) * ds)
            acc_sc[:, sl] = acc_sc[:, sl] * inv[:, h:h + 1]
        mh = acc_sc[...]                                     # (TN, dim_emb) lane-dense
        hblk = (jnp.dot(mh.astype(jnp.bfloat16), wmix_ref[...],
                        preferred_element_type=jnp.float32)
                + bmix_ref[...] + xres_sc[...])
        h_ref[0] = hblk.astype(h_ref.dtype)

    # TODO(synk): hidden / att-score dropouts are identity at p=0 (eval);
    # viz_att_maps (SaveAttMaps stateful parameter capture) has no Pallas
    # equivalent; att_score_norm='constant' branch not implemented.


# --------------------------------------------------------------------------
# Kernel 2: rFF block  out = H + W2 @ gelu(W1 @ LN1(H))
# Kept in a separate pallas_call so the rFF weights never occupy VMEM during
# the attention loop (matters on v7x's 64 MiB VMEM).
# --------------------------------------------------------------------------
def rff_kernel(h_ref, ln1_g_ref, ln1_b_ref, w1_ref, b1_ref, w2_ref, b2_ref,
               out_ref):
    hblk = h_ref[0]                                          # (TR, dim_out) f32
    hn = _layer_norm(hblk, ln1_g_ref[...], ln1_b_ref[...])
    z = jnp.dot(hn.astype(jnp.bfloat16), w1_ref[...],
                preferred_element_type=jnp.float32) + b1_ref[...]
    # exact erf = nn.GELU() default (approximate=True would route to the EUP)
    z = jax.nn.gelu(z, approximate=False)
    z = jnp.dot(z.astype(jnp.bfloat16), w2_ref[...],
                preferred_element_type=jnp.float32) + b2_ref[...]
    out_ref[0] = (hblk + z).astype(out_ref.dtype)


# --------------------------------------------------------------------------
# Wrapper
# --------------------------------------------------------------------------
def _phys_vmem_bytes():
    try:
        return int(pltpu.get_tpu_info().vmem_capacity_bytes)
    except Exception:
        return 64 << 20  # conservative (v7x) if introspection unavailable


def _round_up(x, m):
    return ((x + m - 1) // m) * m


def mab_forward(X, Y, params, *, num_heads, dim_KV, tile_n=None, tile_m=None):
    B, N, dim_Q = X.shape
    _, M, _ = Y.shape
    dim_emb = params["wq"].shape[1]
    dim_out = params["wmix"].shape[1]
    dim_hid = params["w1"].shape[1]
    assert dim_emb % num_heads == 0
    ds = dim_emb // num_heads

    phys = _phys_vmem_bytes()
    tile_cap = 512 if phys >= (96 << 20) else 256   # bigger tiles on v5e/v6e

    if tile_n is None:
        tile_n = min(tile_cap, _round_up(N, 8))
    if tile_m is None:
        tile_m = min(tile_cap, _round_up(M, 16))
    tile_n = max(8, _round_up(min(tile_n, _round_up(N, 8)), 8))
    tile_m = max(16, _round_up(min(tile_m, _round_up(M, 16)), 16))   # bf16 rows

    # v7x has two TensorCores: keep at least 2 units of "parallel" grid.
    if B * pl.cdiv(N, tile_n) < 2 and tile_n > 8:
        tile_n = max(8, _round_up(pl.cdiv(N, 2), 8))

    n_pad = _round_up(N, tile_n)
    m_pad = _round_up(M, tile_m)

    # --- hoisted K/V projections (done once; never recomputed per query tile)
    f32, bf16 = jnp.float32, jnp.bfloat16
    K = (jnp.einsum("bmd,de->bme", Y, params["wk"],
                    preferred_element_type=f32) + params["bk"]).astype(bf16)
    V = (jnp.einsum("bmd,de->bme", Y, params["wv"],
                    preferred_element_type=f32) + params["bv"]).astype(bf16)

    Xp = X
    if n_pad != N:
        Xp = jnp.pad(Xp, ((0, 0), (0, n_pad - N), (0, 0)))
    if m_pad != M:
        K = jnp.pad(K, ((0, 0), (0, m_pad - M), (0, 0)))
        V = jnp.pad(V, ((0, 0), (0, m_pad - M), (0, 0)))

    # bf16 weights for the MXU; biases / LN params stay f32.
    kp = {
        "ln0_g": params["ln0_g"], "ln0_b": params["ln0_b"],
        "wq": params["wq"].astype(bf16), "bq": params["bq"],
        "wres": params["wres"].astype(bf16), "bres": params["bres"],
        "wmix": params["wmix"].astype(bf16), "bmix": params["bmix"],
    }
    rp = {
        "ln1_g": params["ln1_g"], "ln1_b": params["ln1_b"],
        "w1": params["w1"].astype(bf16), "b1": params["b1"],
        "w2": params["w2"].astype(bf16), "b2": params["b2"],
    }

    def const_spec(shape):
        r = len(shape)
        return pl.BlockSpec(shape, lambda *args, _r=r: (0,) * _r)

    # ---------------- attention pallas_call ----------------
    attn_in_specs = [
        pl.BlockSpec((1, tile_n, dim_Q), lambda b, n, m: (b, n, 0)),
        pl.BlockSpec((1, tile_m, dim_emb), lambda b, n, m: (b, m, 0)),
        pl.BlockSpec((1, tile_m, dim_emb), lambda b, n, m: (b, m, 0)),
    ] + [const_spec(kp[name].shape) for name in ATTN_PARAMS]

    attn_scratch = [
        pltpu.VMEM((tile_n, dim_emb), f32),      # q (scaled)
        pltpu.VMEM((tile_n, dim_out), f32),      # x_res
        pltpu.VMEM((tile_n, num_heads), f32),    # running max
        pltpu.VMEM((tile_n, num_heads), f32),    # running sum
        pltpu.VMEM((tile_n, dim_emb), f32),      # attention accumulator
    ]

    attn_blocks = (4 * tile_n * dim_Q * 2            # X tile (dbl buffered)
                   + 2 * tile_m * dim_emb * 2 * 2    # K, V bf16 tiles
                   + 4 * tile_n * dim_out * 2)       # H output tile
    attn_params = (2 * (dim_Q * dim_emb + dim_Q * dim_out + dim_emb * dim_out)
                   + 4 * 2 * (dim_Q + dim_emb + 2 * dim_out))
    attn_scr = 4 * tile_n * (2 * dim_emb + dim_out + 2 * 128)
    attn_est = attn_blocks + 2 * attn_params + attn_scr
    attn_vmem = int(min(0.75 * phys, max(32 << 20, 3 * attn_est)))

    scale = 1.0 / math.sqrt(dim_KV)   # NOTE: 1/sqrt(dim_KV), per NPT reference
    a_kernel = functools.partial(
        attn_kernel, num_heads=num_heads, ds=ds, scale=scale,
        kv_valid=M, tile_m=tile_m, mask_kv=(m_pad != M))

    H = pl.pallas_call(
        a_kernel,
        out_shape=jax.ShapeDtypeStruct((B, n_pad, dim_out), f32),
        grid_spec=pltpu.PrefetchScalarGridSpec(
            num_scalar_prefetch=0,
            grid=(B, n_pad // tile_n, m_pad // tile_m),
            in_specs=attn_in_specs,
            out_specs=pl.BlockSpec((1, tile_n, dim_out),
                                   lambda b, n, m: (b, n, 0)),
            scratch_shapes=attn_scratch,
        ),
        compiler_params=pltpu.CompilerParams(
            dimension_semantics=("parallel", "parallel", "arbitrary"),
            vmem_limit_bytes=attn_vmem,
        ),
    )(Xp, K, V, *[kp[n] for n in ATTN_PARAMS])

    # ---------------- rFF pallas_call ----------------
    rff_in_specs = [pl.BlockSpec((1, tile_n, dim_out), lambda b, n: (b, n, 0))] \
        + [const_spec(rp[name].shape) for name in RFF_PARAMS]
    rff_est = (4 * tile_n * dim_out * 2 * 2
               + 2 * (2 * dim_out * dim_hid) * 2
               + 4 * tile_n * dim_hid * 2)
    rff_vmem = int(min(0.75 * phys, max(32 << 20, 3 * rff_est)))

    out = pl.pallas_call(
        rff_kernel,
        out_shape=jax.ShapeDtypeStruct((B, n_pad, dim_out), X.dtype),
        grid_spec=pltpu.PrefetchScalarGridSpec(
            num_scalar_prefetch=0,
            grid=(B, n_pad // tile_n),
            in_specs=rff_in_specs,
            out_specs=pl.BlockSpec((1, tile_n, dim_out), lambda b, n: (b, n, 0)),
        ),
        compiler_params=pltpu.CompilerParams(
            dimension_semantics=("parallel", "parallel"),
            vmem_limit_bytes=rff_vmem,
        ),
    )(H, *[rp[n] for n in RFF_PARAMS])

    if n_pad != N:
        out = out[:, :N, :]
    return out


# --------------------------------------------------------------------------
# Plain-JAX reference mirroring the PyTorch forward (f32).
# --------------------------------------------------------------------------
def mab_reference(X, Y, params, *, num_heads, dim_KV):
    def ln(v, g, b):
        mu = v.mean(-1, keepdims=True)
        var = ((v - mu) ** 2).mean(-1, keepdims=True)
        return (v - mu) / jnp.sqrt(var + EPS) * g + b

    xm = ln(X, params["ln0_g"][0], params["ln0_b"][0])
    Q = xm @ params["wq"] + params["bq"][0]
    K = Y @ params["wk"] + params["bk"][0]
    V = Y @ params["wv"] + params["bv"][0]
    Xres = X @ params["wres"] + params["bres"][0]
    B, N, E = Q.shape
    M = Y.shape[1]
    ds = E // num_heads
    Qh = Q.reshape(B, N, num_heads, ds)
    Kh = K.reshape(B, M, num_heads, ds)
    Vh = V.reshape(B, M, num_heads, ds)
    A = jnp.einsum('bnhd,bmhd->bhnm', Qh, Kh) / math.sqrt(dim_KV)
    A = jax.nn.softmax(A, axis=-1)
    mh = jnp.einsum('bhnm,bmhd->bnhd', A, Vh).reshape(B, N, E)
    H = mh @ params["wmix"] + params["bmix"][0] + Xres
    Hr = ln(H, params["ln1_g"][0], params["ln1_b"][0])
    z = jax.nn.gelu(Hr @ params["w1"] + params["b1"][0], approximate=False)
    z = z @ params["w2"] + params["b2"][0]
    return H + z


if __name__ == "__main__":
    # Small deterministic setup exercising multi-tile query AND KV grids
    # (2 n-tiles x 2 kv-tiles per batch) and the 16-row bf16 KV blocks.
    B, N, M = 2, 16, 32
    dim_Q = dim_KV = dim_emb = dim_out = 32
    num_heads = 4

    key = jax.random.PRNGKey(0)
    ks = jax.random.split(key, 18)

    def w(k, shape, s=0.05):
        return (s * jax.random.normal(k, shape)).astype(jnp.float32)

    params = {
        "ln0_g": 1.0 + w(ks[0], (1, dim_Q)),
        "ln0_b": w(ks[1], (1, dim_Q)),
        "wq": w(ks[2], (dim_Q, dim_emb)),   "bq": w(ks[3], (1, dim_emb)),
        "wk": w(ks[4], (dim_KV, dim_emb)),  "bk": w(ks[5], (1, dim_emb)),
        "wv": w(ks[6], (dim_KV, dim_emb)),  "bv": w(ks[7], (1, dim_emb)),
        "wres": w(ks[8], (dim_Q, dim_out)), "bres": w(ks[9], (1, dim_out)),
        "wmix": w(ks[10], (dim_emb, dim_out)), "bmix": w(ks[11], (1, dim_out)),
        "ln1_g": 1.0 + w(ks[12], (1, dim_out)),
        "ln1_b": w(ks[13], (1, dim_out)),
        "w1": w(ks[14], (dim_out, 4 * dim_out)), "b1": w(ks[15], (1, 4 * dim_out)),
        "w2": w(ks[16], (4 * dim_out, dim_out)), "b2": w(ks[17], (1, dim_out)),
    }

    kx, ky = jax.random.split(jax.random.PRNGKey(7))
    X = jax.random.normal(kx, (B, N, dim_Q), dtype=jnp.float32)
    Y = jax.random.normal(ky, (B, M, dim_KV), dtype=jnp.float32)

    out = mab_forward(X, Y, params, num_heads=num_heads, dim_KV=dim_KV,
                      tile_n=8, tile_m=16)
    out = jax.block_until_ready(out)

    ref = mab_reference(X, Y, params, num_heads=num_heads, dim_KV=dim_KV)
    assert out.shape == (B, N, dim_out)
    # tolerance covers bf16 MXU operands + approx-reciprocal softmax normalization
    err = float(jnp.max(jnp.abs(out - ref)))
    assert err < 2e-2, f"mismatch, max|err|={err}"

    print("KERNEL_OK")
</pallas_src>

<mosaic_0001>
module attributes {stable_mosaic.version = 11 : i64} {
  func.func @attn_kernel(%arg0: i32, %arg1: i32, %arg2: i32, %arg3: memref<1x8x32xf32, #tpu.memory_space<vmem>>, %arg4: memref<1x16x32xbf16, #tpu.memory_space<vmem>>, %arg5: memref<1x16x32xbf16, #tpu.memory_space<vmem>>, %arg6: memref<1x32xf32, #tpu.memory_space<vmem>>, %arg7: memref<1x32xf32, #tpu.memory_space<vmem>>, %arg8: memref<32x32xbf16, #tpu.memory_space<vmem>>, %arg9: memref<1x32xf32, #tpu.memory_space<vmem>>, %arg10: memref<32x32xbf16, #tpu.memory_space<vmem>>, %arg11: memref<1x32xf32, #tpu.memory_space<vmem>>, %arg12: memref<32x32xbf16, #tpu.memory_space<vmem>>, %arg13: memref<1x32xf32, #tpu.memory_space<vmem>>, %arg14: memref<1x8x32xf32, #tpu.memory_space<vmem>>, %arg15: memref<8x32xf32, #tpu.memory_space<vmem>>, %arg16: memref<8x32xf32, #tpu.memory_space<vmem>>, %arg17: memref<8x4xf32, #tpu.memory_space<vmem>>, %arg18: memref<8x4xf32, #tpu.memory_space<vmem>>, %arg19: memref<8x32xf32, #tpu.memory_space<vmem>>) attributes {dimension_semantics = [#tpu.dimension_semantics<parallel>, #tpu.dimension_semantics<parallel>, #tpu.dimension_semantics<arbitrary>], iteration_bounds = array<i64: 2, 2, 2>, scalar_prefetch = 0 : i64, scratch_operands = 5 : i64, tpu.core_type = #tpu.core_type<tc>, window_params = [{transform_indices = @transform_0, window_bounds = array<i64: 1, 8, 32>}, {transform_indices = @transform_1, window_bounds = array<i64: 1, 16, 32>}, {transform_indices = @transform_2, window_bounds = array<i64: 1, 16, 32>}, {pipeline_mode = #tpu.pipeline_mode<synchronous>, transform_indices = @transform_3, window_bounds = array<i64: 1, 32>}, {pipeline_mode = #tpu.pipeline_mode<synchronous>, transform_indices = @transform_4, window_bounds = array<i64: 1, 32>}, {pipeline_mode = #tpu.pipeline_mode<synchronous>, transform_indices = @transform_5, window_bounds = array<i64: 32, 32>}, {pipeline_mode = #tpu.pipeline_mode<synchronous>, transform_indices = @transform_6, window_bounds = array<i64: 1, 32>}, {pipeline_mode = #tpu.pipeline_mode<synchronous>, transform_indices = @transform_7, window_bounds = array<i64: 32, 32>}, {pipeline_mode = #tpu.pipeline_mode<synchronous>, transform_indices = @transform_8, window_bounds = array<i64: 1, 32>}, {pipeline_mode = #tpu.pipeline_mode<synchronous>, transform_indices = @transform_9, window_bounds = array<i64: 32, 32>}, {pipeline_mode = #tpu.pipeline_mode<synchronous>, transform_indices = @transform_10, window_bounds = array<i64: 1, 32>}, {transform_indices = @transform_11, window_bounds = array<i64: 1, 8, 32>}]} {
    %c0_i32 = arith.constant 0 : i32
    %0 = arith.cmpi eq, %arg2, %c0_i32 : i32
    %1 = arith.extui %0 : i1 to i32
    %c0_i32_0 = arith.constant 0 : i32
    %2 = arith.cmpi ne, %1, %c0_i32_0 : i32
    scf.if %2 {
      %c0_72 = arith.constant 0 : index
      %c0_73 = arith.constant 0 : index
      %c0_74 = arith.constant 0 : index
      %122 = vector.load %arg3[%c0_72, %c0_73, %c0_74] : memref<1x8x32xf32, #tpu.memory_space<vmem>>, vector<1x8x32xf32>
      %123 = vector.shape_cast %122 : vector<1x8x32xf32> to vector<8x32xf32>
      %c0_75 = arith.constant 0 : index
      %c0_76 = arith.constant 0 : index
      %124 = vector.load %arg6[%c0_75, %c0_76] : memref<1x32xf32, #tpu.memory_space<vmem>>, vector<1x32xf32>
      %c0_77 = arith.constant 0 : index
      %c0_78 = arith.constant 0 : index
      %125 = vector.load %arg7[%c0_77, %c0_78] : memref<1x32xf32, #tpu.memory_space<vmem>>, vector<1x32xf32>
      %cst_79 = arith.constant dense<0.000000e+00> : vector<8xf32>
      %126 = vector.multi_reduction <add>, %123, %cst_79 [1] : vector<8x32xf32> to vector<8xf32>
      %127 = vector.shape_cast %126 : vector<8xf32> to vector<8x1xf32>
      %cst_80 = arith.constant 3.200000e+01 : f32
      %128 = vector.broadcast %cst_80 : f32 to vector<8x1xf32>
      %129 = arith.divf %127, %128 : vector<8x1xf32>
      %130 = vector.broadcast %129 : vector<8x1xf32> to vector<8x32xf32>
      %131 = arith.subf %123, %130 : vector<8x32xf32>
      %132 = arith.mulf %131, %131 : vector<8x32xf32>
      %cst_81 = arith.constant dense<0.000000e+00> : vector<8xf32>
      %133 = vector.multi_reduction <add>, %132, %cst_81 [1] : vector<8x32xf32> to vector<8xf32>
      %134 = vector.shape_cast %133 : vector<8xf32> to vector<8x1xf32>
      %cst_82 = arith.constant 3.200000e+01 : f32
      %135 = vector.broadcast %cst_82 : f32 to vector<8x1xf32>
      %136 = arith.divf %134, %135 : vector<8x1xf32>
      %137 = vector.broadcast %129 : vector<8x1xf32> to vector<8x32xf32>
      %138 = arith.subf %123, %137 : vector<8x32xf32>
      %cst_83 = arith.constant 9.99999974E-6 : f32
      %139 = vector.broadcast %cst_83 : f32 to vector<8x1xf32>
      %140 = arith.addf %136, %139 : vector<8x1xf32>
      %141 = math.rsqrt %140 : vector<8x1xf32>
      %142 = vector.broadcast %141 : vector<8x1xf32> to vector<8x32xf32>
      %143 = arith.mulf %138, %142 : vector<8x32xf32>
      %144 = vector.broadcast %124 : vector<1x32xf32> to vector<8x32xf32>
      %145 = arith.mulf %143, %144 : vector<8x32xf32>
      %146 = vector.broadcast %125 : vector<1x32xf32> to vector<8x32xf32>
      %147 = arith.addf %145, %146 : vector<8x32xf32>
      %148 = arith.truncf %147 : vector<8x32xf32> to vector<8x32xbf16>
      %c0_84 = arith.constant 0 : index
      %c0_85 = arith.constant 0 : index
      %149 = vector.load %arg8[%c0_84, %c0_85] : memref<32x32xbf16, #tpu.memory_space<vmem>>, vector<32x32xbf16>
      %cst_86 = arith.constant dense<0.000000e+00> : vector<8x32xf32>
      %150 = tpu.matmul %148, %149, %cst_86 {dimension_numbers = #tpu.dot_dimension_numbers<[1], [0], [0], [1], [0, 0, 1, 1], [], []>} : vector<8x32xbf16>, vector<32x32xbf16>, vector<8x32xf32> -> vector<8x32xf32>
      %c0_87 = arith.constant 0 : index
      %c0_88 = arith.constant 0 : index
      %151 = vector.load %arg9[%c0_87, %c0_88] : memref<1x32xf32, #tpu.memory_space<vmem>>, vector<1x32xf32>
      %152 = vector.broadcast %151 : vector<1x32xf32> to vector<8x32xf32>
      %153 = arith.addf %150, %152 : vector<8x32xf32>
      %cst_89 = arith.constant 0.176776692 : f32
      %154 = vector.broadcast %cst_89 : f32 to vector<8x32xf32>
      %155 = arith.mulf %153, %154 : vector<8x32xf32>
      %c0_90 = arith.constant 0 : index
      %c0_91 = arith.constant 0 : index
      %156 = vector.load %arg15[%c0_90, %c0_91] : memref<8x32xf32, #tpu.memory_space<vmem>>, vector<8x32xf32>
      tpu.vector_store %arg15[%c0_90, %c0_91], %155 {strides = array<i32>} : memref<8x32xf32, #tpu.memory_space<vmem>>, vector<8x32xf32>,
      %157 = arith.truncf %123 : vector<8x32xf32> to vector<8x32xbf16>
      %c0_92 = arith.constant 0 : index
      %c0_93 = arith.constant 0 : index
      %158 = vector.load %arg10[%c0_92, %c0_93] : memref<32x32xbf16, #tpu.memory_space<vmem>>, vector<32x32xbf16>
      %cst_94 = arith.constant dense<0.000000e+00> : vector<8x32xf32>
      %159 = tpu.matmul %157, %158, %cst_94 {dimension_numbers = #tpu.dot_dimension_numbers<[1], [0], [0], [1], [0, 0, 1, 1], [], []>} : vector<8x32xbf16>, vector<32x32xbf16>, vector<8x32xf32> -> vector<8x32xf32>
      %c0_95 = arith.constant 0 : index
      %c0_96 = arith.constant 0 : index
      %160 = vector.load %arg11[%c0_95, %c0_96] : memref<1x32xf32, #tpu.memory_space<vmem>>, vector<1x32xf32>
      %161 = vector.broadcast %160 : vector<1x32xf32> to vector<8x32xf32>
      %162 = arith.addf %159, %161 : vector<8x32xf32>
      %c0_97 = arith.constant 0 : index
      %c0_98 = arith.constant 0 : index
      %163 = vector.load %arg16[%c0_97, %c0_98] : memref<8x32xf32, #tpu.memory_space<vmem>>, vector<8x32xf32>
      tpu.vector_store %arg16[%c0_97, %c0_98], %162 {strides = array<i32>} : memref<8x32xf32, #tpu.memory_space<vmem>>, vector<8x32xf32>,
      %cst_99 = arith.constant 0xFF800000 : f32
      %164 = vector.broadcast %cst_99 : f32 to vector<8x4xf32>
      %c0_100 = arith.constant 0 : index
      %c0_101 = arith.constant 0 : index
      %165 = vector.load %arg17[%c0_100, %c0_101] : memref<8x4xf32, #tpu.memory_space<vmem>>, vector<8x4xf32>
      tpu.vector_store %arg17[%c0_100, %c0_101], %164 {strides = array<i32>} : memref<8x4xf32, #tpu.memory_space<vmem>>, vector<8x4xf32>,
      %cst_102 = arith.constant 0.000000e+00 : f32
      %166 = vector.broadcast %cst_102 : f32 to vector<8x4xf32>
      %c0_103 = arith.constant 0 : index
      %c0_104 = arith.constant 0 : index
      %167 = vector.load %arg18[%c0_103, %c0_104] : memref<8x4xf32, #tpu.memory_space<vmem>>, vector<8x4xf32>
      tpu.vector_store %arg18[%c0_103, %c0_104], %166 {strides = array<i32>} : memref<8x4xf32, #tpu.memory_space<vmem>>, vector<8x4xf32>,
      %cst_105 = arith.constant 0.000000e+00 : f32
      %168 = vector.broadcast %cst_105 : f32 to vector<8x32xf32>
      %c0_106 = arith.constant 0 : index
      %c0_107 = arith.constant 0 : index
      %169 = vector.load %arg19[%c0_106, %c0_107] : memref<8x32xf32, #tpu.memory_space<vmem>>, vector<8x32xf32>
      tpu.vector_store %arg19[%c0_106, %c0_107], %168 {strides = array<i32>} : memref<8x32xf32, #tpu.memory_space<vmem>>, vector<8x32xf32>,
    } else {
    }
    %c0 = arith.constant 0 : index
    %c0_1 = arith.constant 0 : index
    %c0_2 = arith.constant 0 : index
    %3 = vector.load %arg4[%c0, %c0_1, %c0_2] : memref<1x16x32xbf16, #tpu.memory_space<vmem>>, vector<1x16x32xbf16>
    %4 = vector.shape_cast %3 : vector<1x16x32xbf16> to vector<16x32xbf16>
    %c0_3 = arith.constant 0 : index
    %c0_4 = arith.constant 0 : index
    %c0_5 = arith.constant 0 : index
    %5 = vector.load %arg5[%c0_3, %c0_4, %c0_5] : memref<1x16x32xbf16, #tpu.memory_space<vmem>>, vector<1x16x32xbf16>
    %6 = vector.shape_cast %5 : vector<1x16x32xbf16> to vector<16x32xbf16>
    %c0_6 = arith.constant 0 : index
    %c0_7 = arith.constant 0 : index
    %7 = vector.load %arg15[%c0_6, %c0_7] : memref<8x32xf32, #tpu.memory_space<vmem>>, vector<8x8xf32>
    %8 = arith.truncf %7 : vector<8x8xf32> to vector<8x8xbf16>
    %9 = vector.extract_strided_slice %4 {offsets = [0, 0], sizes = [16, 8], strides = [1, 1]} : vector<16x32xbf16> to vector<16x8xbf16>
    %cst = arith.constant dense<0.000000e+00> : vector<8x16xf32>
    %10 = tpu.matmul %8, %9, %cst {dimension_numbers = #tpu.dot_dimension_numbers<[1], [1], [0], [0], [0, 0, 1, 0], [], []>} : vector<8x8xbf16>, vector<16x8xbf16>, vector<8x16xf32> -> vector<8x16xf32>
    %c0_8 = arith.constant 0 : index
    %c0_9 = arith.constant 0 : index
    %11 = vector.load %arg17[%c0_8, %c0_9] : memref<8x4xf32, #tpu.memory_space<vmem>>, vector<8x1xf32>
    %cst_10 = arith.constant dense<0xFF800000> : vector<8xf32>
    %12 = vector.multi_reduction <maximumf>, %10, %cst_10 [1] : vector<8x16xf32> to vector<8xf32>
    %13 = vector.shape_cast %12 : vector<8xf32> to vector<8x1xf32>
    %14 = arith.maximumf %11, %13 : vector<8x1xf32>
    %15 = arith.subf %11, %14 : vector<8x1xf32>
    %16 = math.exp %15 : vector<8x1xf32>
    %17 = vector.broadcast %14 : vector<8x1xf32> to vector<8x16xf32>
    %18 = arith.subf %10, %17 : vector<8x16xf32>
    %19 = math.exp %18 : vector<8x16xf32>
    %c0_11 = arith.constant 0 : index
    %c0_12 = arith.constant 0 : index
    %20 = vector.load %arg18[%c0_11, %c0_12] : memref<8x4xf32, #tpu.memory_space<vmem>>, vector<8x1xf32>
    %21 = arith.mulf %16, %20 : vector<8x1xf32>
    %cst_13 = arith.constant dense<0.000000e+00> : vector<8xf32>
    %22 = vector.multi_reduction <add>, %19, %cst_13 [1] : vector<8x16xf32> to vector<8xf32>
    %23 = vector.shape_cast %22 : vector<8xf32> to vector<8x1xf32>
    %24 = arith.addf %21, %23 : vector<8x1xf32>
    %c0_14 = arith.constant 0 : index
    %c0_15 = arith.constant 0 : index
    %25 = vector.load %arg18[%c0_14, %c0_15] : memref<8x4xf32, #tpu.memory_space<vmem>>, vector<8x1xf32>
    tpu.vector_store %arg18[%c0_14, %c0_15], %24 {strides = array<i32>} : memref<8x4xf32, #tpu.memory_space<vmem>>, vector<8x1xf32>,
    %c0_16 = arith.constant 0 : index
    %c0_17 = arith.constant 0 : index
    %26 = vector.load %arg19[%c0_16, %c0_17] : memref<8x32xf32, #tpu.memory_space<vmem>>, vector<8x8xf32>
    %27 = vector.broadcast %16 : vector<8x1xf32> to vector<8x8xf32>
    %28 = arith.mulf %27, %26 : vector<8x8xf32>
    %29 = arith.truncf %19 : vector<8x16xf32> to vector<8x16xbf16>
    %30 = vector.extract_strided_slice %6 {offsets = [0, 0], sizes = [16, 8], strides = [1, 1]} : vector<16x32xbf16> to vector<16x8xbf16>
    %cst_18 = arith.constant dense<0.000000e+00> : vector<8x8xf32>
    %31 = tpu.matmul %29, %30, %cst_18 {dimension_numbers = #tpu.dot_dimension_numbers<[1], [0], [0], [1], [0, 0, 1, 1], [], []>} : vector<8x16xbf16>, vector<16x8xbf16>, vector<8x8xf32> -> vector<8x8xf32>
    %32 = arith.addf %28, %31 : vector<8x8xf32>
    %c0_19 = arith.constant 0 : index
    %c0_20 = arith.constant 0 : index
    %33 = vector.load %arg19[%c0_19, %c0_20] : memref<8x32xf32, #tpu.memory_space<vmem>>, vector<8x8xf32>
    tpu.vector_store %arg19[%c0_19, %c0_20], %32 {strides = array<i32>} : memref<8x32xf32, #tpu.memory_space<vmem>>, vector<8x8xf32>,
    %c0_21 = arith.constant 0 : index
    %c0_22 = arith.constant 0 : index
    %34 = vector.load %arg17[%c0_21, %c0_22] : memref<8x4xf32, #tpu.memory_space<vmem>>, vector<8x1xf32>
    tpu.vector_store %arg17[%c0_21, %c0_22], %14 {strides = array<i32>} : memref<8x4xf32, #tpu.memory_space<vmem>>, vector<8x1xf32>,
    %c0_23 = arith.constant 0 : index
    %c8 = arith.constant 8 : index
    %35 = vector.load %arg15[%c0_23, %c8] : memref<8x32xf32, #tpu.memory_space<vmem>>, vector<8x8xf32>
    %36 = arith.truncf %35 : vector<8x8xf32> to vector<8x8xbf16>
    %37 = vector.extract_strided_slice %4 {offsets = [0, 8], sizes = [16, 8], strides = [1, 1]} : vector<16x32xbf16> to vector<16x8xbf16>
    %cst_24 = arith.constant dense<0.000000e+00> : vector<8x16xf32>
    %38 = tpu.matmul %36, %37, %cst_24 {dimension_numbers = #tpu.dot_dimension_numbers<[1], [1], [0], [0], [0, 0, 1, 0], [], []>} : vector<8x8xbf16>, vector<16x8xbf16>, vector<8x16xf32> -> vector<8x16xf32>
    %c0_25 = arith.constant 0 : index
    %c1 = arith.constant 1 : index
    %39 = vector.load %arg17[%c0_25, %c1] : memref<8x4xf32, #tpu.memory_space<vmem>>, vector<8x1xf32>
    %cst_26 = arith.constant dense<0xFF800000> : vector<8xf32>
    %40 = vector.multi_reduction <maximumf>, %38, %cst_26 [1] : vector<8x16xf32> to vector<8xf32>
    %41 = vector.shape_cast %40 : vector<8xf32> to vector<8x1xf32>
    %42 = arith.maximumf %39, %41 : vector<8x1xf32>
    %43 = arith.subf %39, %42 : vector<8x1xf32>
    %44 = math.exp %43 : vector<8x1xf32>
    %45 = vector.broadcast %42 : vector<8x1xf32> to vector<8x16xf32>
    %46 = arith.subf %38, %45 : vector<8x16xf32>
    %47 = math.exp %46 : vector<8x16xf32>
    %c0_27 = arith.constant 0 : index
    %c1_28 = arith.constant 1 : index
    %48 = vector.load %arg18[%c0_27, %c1_28] : memref<8x4xf32, #tpu.memory_space<vmem>>, vector<8x1xf32>
    %49 = arith.mulf %44, %48 : vector<8x1xf32>
    %cst_29 = arith.constant dense<0.000000e+00> : vector<8xf32>
    %50 = vector.multi_reduction <add>, %47, %cst_29 [1] : vector<8x16xf32> to vector<8xf32>
    %51 = vector.shape_cast %50 : vector<8xf32> to vector<8x1xf32>
    %52 = arith.addf %49, %51 : vector<8x1xf32>
    %c0_30 = arith.constant 0 : index
    %c1_31 = arith.constant 1 : index
    %53 = vector.load %arg18[%c0_30, %c1_31] : memref<8x4xf32, #tpu.memory_space<vmem>>, vector<8x1xf32>
    tpu.vector_store %arg18[%c0_30, %c1_31], %52 {strides = array<i32>} : memref<8x4xf32, #tpu.memory_space<vmem>>, vector<8x1xf32>,
    %c0_32 = arith.constant 0 : index
    %c8_33 = arith.constant 8 : index
    %54 = vector.load %arg19[%c0_32, %c8_33] : memref<8x32xf32, #tpu.memory_space<vmem>>, vector<8x8xf32>
    %55 = vector.broadcast %44 : vector<8x1xf32> to vector<8x8xf32>
    %56 = arith.mulf %55, %54 : vector<8x8xf32>
    %57 = arith.truncf %47 : vector<8x16xf32> to vector<8x16xbf16>
    %58 = vector.extract_strided_slice %6 {offsets = [0, 8], sizes = [16, 8], strides = [1, 1]} : vector<16x32xbf16> to vector<16x8xbf16>
    %cst_34 = arith.constant dense<0.000000e+00> : vector<8x8xf32>
    %59 = tpu.matmul %57, %58, %cst_34 {dimension_numbers = #tpu.dot_dimension_numbers<[1], [0], [0], [1], [0, 0, 1, 1], [], []>} : vector<8x16xbf16>, vector<16x8xbf16>, vector<8x8xf32> -> vector<8x8xf32>
    %60 = arith.addf %56, %59 : vector<8x8xf32>
    %c0_35 = arith.constant 0 : index
    %c8_36 = arith.constant 8 : index
    %61 = vector.load %arg19[%c0_35, %c8_36] : memref<8x32xf32, #tpu.memory_space<vmem>>, vector<8x8xf32>
    tpu.vector_store %arg19[%c0_35, %c8_36], %60 {strides = array<i32>} : memref<8x32xf32, #tpu.memory_space<vmem>>, vector<8x8xf32>,
    %c0_37 = arith.constant 0 : index
    %c1_38 = arith.constant 1 : index
    %62 = vector.load %arg17[%c0_37, %c1_38] : memref<8x4xf32, #tpu.memory_space<vmem>>, vector<8x1xf32>
    tpu.vector_store %arg17[%c0_37, %c1_38], %42 {strides = array<i32>} : memref<8x4xf32, #tpu.memory_space<vmem>>, vector<8x1xf32>,
    %c0_39 = arith.constant 0 : index
    %c16 = arith.constant 16 : index
    %63 = vector.load %arg15[%c0_39, %c16] : memref<8x32xf32, #tpu.memory_space<vmem>>, vector<8x8xf32>
    %64 = arith.truncf %63 : vector<8x8xf32> to vector<8x8xbf16>
    %65 = vector.extract_strided_slice %4 {offsets = [0, 16], sizes = [16, 8], strides = [1, 1]} : vector<16x32xbf16> to vector<16x8xbf16>
    %cst_40 = arith.constant dense<0.000000e+00> : vector<8x16xf32>
    %66 = tpu.matmul %64, %65, %cst_40 {dimension_numbers = #tpu.dot_dimension_numbers<[1], [1], [0], [0], [0, 0, 1, 0], [], []>} : vector<8x8xbf16>, vector<16x8xbf16>, vector<8x16xf32> -> vector<8x16xf32>
    %c0_41 = arith.constant 0 : index
    %c2 = arith.constant 2 : index
    %67 = vector.load %arg17[%c0_41, %c2] : memref<8x4xf32, #tpu.memory_space<vmem>>, vector<8x1xf32>
    %cst_42 = arith.constant dense<0xFF800000> : vector<8xf32>
    %68 = vector.multi_reduction <maximumf>, %66, %cst_42 [1] : vector<8x16xf32> to vector<8xf32>
    %69 = vector.shape_cast %68 : vector<8xf32> to vector<8x1xf32>
    %70 = arith.maximumf %67, %69 : vector<8x1xf32>
    %71 = arith.subf %67, %70 : vector<8x1xf32>
    %72 = math.exp %71 : vector<8x1xf32>
    %73 = vector.broadcast %70 : vector<8x1xf32> to vector<8x16xf32>
    %74 = arith.subf %66, %73 : vector<8x16xf32>
    %75 = math.exp %74 : vector<8x16xf32>
    %c0_43 = arith.constant 0 : index
    %c2_44 = arith.constant 2 : index
    %76 = vector.load %arg18[%c0_43, %c2_44] : memref<8x4xf32, #tpu.memory_space<vmem>>, vector<8x1xf32>
    %77 = arith.mulf %72, %76 : vector<8x1xf32>
    %cst_45 = arith.constant dense<0.000000e+00> : vector<8xf32>
    %78 = vector.multi_reduction <add>, %75, %cst_45 [1] : vector<8x16xf32> to vector<8xf32>
    %79 = vector.shape_cast %78 : vector<8xf32> to vector<8x1xf32>
    %80 = arith.addf %77, %79 : vector<8x1xf32>
    %c0_46 = arith.constant 0 : index
    %c2_47 = arith.constant 2 : index
    %81 = vector.load %arg18[%c0_46, %c2_47] : memref<8x4xf32, #tpu.memory_space<vmem>>, vector<8x1xf32>
    tpu.vector_store %arg18[%c0_46, %c2_47], %80 {strides = array<i32>} : memref<8x4xf32, #tpu.memory_space<vmem>>, vector<8x1xf32>,
    %c0_48 = arith.constant 0 : index
    %c16_49 = arith.constant 16 : index
    %82 = vector.load %arg19[%c0_48, %c16_49] : memref<8x32xf32, #tpu.memory_space<vmem>>, vector<8x8xf32>
    %83 = vector.broadcast %72 : vector<8x1xf32> to vector<8x8xf32>
    %84 = arith.mulf %83, %82 : vector<8x8xf32>
    %85 = arith.truncf %75 : vector<8x16xf32> to vector<8x16xbf16>
    %86 = vector.extract_strided_slice %6 {offsets = [0, 16], sizes = [16, 8], strides = [1, 1]} : vector<16x32xbf16> to vector<16x8xbf16>
    %cst_50 = arith.constant dense<0.000000e+00> : vector<8x8xf32>
    %87 = tpu.matmul %85, %86, %cst_50 {dimension_numbers = #tpu.dot_dimension_numbers<[1], [0], [0], [1], [0, 0, 1, 1], [], []>} : vector<8x16xbf16>, vector<16x8xbf16>, vector<8x8xf32> -> vector<8x8xf32>
    %88 = arith.addf %84, %87 : vector<8x8xf32>
    %c0_51 = arith.constant 0 : index
    %c16_52 = arith.constant 16 : index
    %89 = vector.load %arg19[%c0_51, %c16_52] : memref<8x32xf32, #tpu.memory_space<vmem>>, vector<8x8xf32>
    tpu.vector_store %arg19[%c0_51, %c16_52], %88 {strides = array<i32>} : memref<8x32xf32, #tpu.memory_space<vmem>>, vector<8x8xf32>,
    %c0_53 = arith.constant 0 : index
    %c2_54 = arith.constant 2 : index
    %90 = vector.load %arg17[%c0_53, %c2_54] : memref<8x4xf32, #tpu.memory_space<vmem>>, vector<8x1xf32>
    tpu.vector_store %arg17[%c0_53, %c2_54], %70 {strides = array<i32>} : memref<8x4xf32, #tpu.memory_space<vmem>>, vector<8x1xf32>,
    %c0_55 = arith.constant 0 : index
    %c24 = arith.constant 24 : index
    %91 = vector.load %arg15[%c0_55, %c24] : memref<8x32xf32, #tpu.memory_space<vmem>>, vector<8x8xf32>
    %92 = arith.truncf %91 : vector<8x8xf32> to vector<8x8xbf16>
    %93 = vector.extract_strided_slice %4 {offsets = [0, 24], sizes = [16, 8], strides = [1, 1]} : vector<16x32xbf16> to vector<16x8xbf16>
    %cst_56 = arith.constant dense<0.000000e+00> : vector<8x16xf32>
    %94 = tpu.matmul %92, %93, %cst_56 {dimension_numbers = #tpu.dot_dimension_numbers<[1], [1], [0], [0], [0, 0, 1, 0], [], []>} : vector<8x8xbf16>, vector<16x8xbf16>, vector<8x16xf32> -> vector<8x16xf32>
    %c0_57 = arith.constant 0 : index
    %c3 = arith.constant 3 : index
    %95 = vector.load %arg17[%c0_57, %c3] : memref<8x4xf32, #tpu.memory_space<vmem>>, vector<8x1xf32>
    %cst_58 = arith.constant dense<0xFF800000> : vector<8xf32>
    %96 = vector.multi_reduction <maximumf>, %94, %cst_58 [1] : vector<8x16xf32> to vector<8xf32>
    %97 = vector.shape_cast %96 : vector<8xf32> to vector<8x1xf32>
    %98 = arith.maximumf %95, %97 : vector<8x1xf32>
    %99 = arith.subf %95, %98 : vector<8x1xf32>
    %100 = math.exp %99 : vector<8x1xf32>
    %101 = vector.broadcast %98 : vector<8x1xf32> to vector<8x16xf32>
    %102 = arith.subf %94, %101 : vector<8x16xf32>
    %103 = math.exp %102 : vector<8x16xf32>
    %c0_59 = arith.constant 0 : index
    %c3_60 = arith.constant 3 : index
    %104 = vector.load %arg18[%c0_59, %c3_60] : memref<8x4xf32, #tpu.memory_space<vmem>>, vector<8x1xf32>
    %105 = arith.mulf %100, %104 : vector<8x1xf32>
    %cst_61 = arith.constant dense<0.000000e+00> : vector<8xf32>
    %106 = vector.multi_reduction <add>, %103, %cst_61 [1] : vector<8x16xf32> to vector<8xf32>
    %107 = vector.shape_cast %106 : vector<8xf32> to vector<8x1xf32>
    %108 = arith.addf %105, %107 : vector<8x1xf32>
    %c0_62 = arith.constant 0 : index
    %c3_63 = arith.constant 3 : index
    %109 = vector.load %arg18[%c0_62, %c3_63] : memref<8x4xf32, #tpu.memory_space<vmem>>, vector<8x1xf32>
    tpu.vector_store %arg18[%c0_62, %c3_63], %108 {strides = array<i32>} : memref<8x4xf32, #tpu.memory_space<vmem>>, vector<8x1xf32>,
    %c0_64 = arith.constant 0 : index
    %c24_65 = arith.constant 24 : index
    %110 = vector.load %arg19[%c0_64, %c24_65] : memref<8x32xf32, #tpu.memory_space<vmem>>, vector<8x8xf32>
    %111 = vector.broadcast %100 : vector<8x1xf32> to vector<8x8xf32>
    %112 = arith.mulf %111, %110 : vector<8x8xf32>
    %113 = arith.truncf %103 : vector<8x16xf32> to vector<8x16xbf16>
    %114 = vector.extract_strided_slice %6 {offsets = [0, 24], sizes = [16, 8], strides = [1, 1]} : vector<16x32xbf16> to vector<16x8xbf16>
    %cst_66 = arith.constant dense<0.000000e+00> : vector<8x8xf32>
    %115 = tpu.matmul %113, %114, %cst_66 {dimension_numbers = #tpu.dot_dimension_numbers<[1], [0], [0], [1], [0, 0, 1, 1], [], []>} : vector<8x16xbf16>, vector<16x8xbf16>, vector<8x8xf32> -> vector<8x8xf32>
    %116 = arith.addf %112, %115 : vector<8x8xf32>
    %c0_67 = arith.constant 0 : index
    %c24_68 = arith.constant 24 : index
    %117 = vector.load %arg19[%c0_67, %c24_68] : memref<8x32xf32, #tpu.memory_space<vmem>>, vector<8x8xf32>
    tpu.vector_store %arg19[%c0_67, %c24_68], %116 {strides = array<i32>} : memref<8x32xf32, #tpu.memory_space<vmem>>, vector<8x8xf32>,
    %c0_69 = arith.constant 0 : index
    %c3_70 = arith.constant 3 : index
    %118 = vector.load %arg17[%c0_69, %c3_70] : memref<8x4xf32, #tpu.memory_space<vmem>>, vector<8x1xf32>
    tpu.vector_store %arg17[%c0_69, %c3_70], %98 {strides = array<i32>} : memref<8x4xf32, #tpu.memory_space<vmem>>, vector<8x1xf32>,
    %c1_i32 = arith.constant 1 : i32
    %119 = arith.cmpi eq, %arg2, %c1_i32 : i32
    %120 = arith.extui %119 : i1 to i32
    %c0_i32_71 = arith.constant 0 : i32
    %121 = arith.cmpi ne, %120, %c0_i32_71 : i32
    scf.if %121 {
      %c0_72 = arith.constant 0 : index
      %c0_73 = arith.constant 0 : index
      %122 = vector.load %arg18[%c0_72, %c0_73] : memref<8x4xf32, #tpu.memory_space<vmem>>, vector<8x4xf32>
      %123 = tpu.reciprocal %122 {approx = true} : vector<8x4xf32> -> vector<8x4xf32>
      %c0_74 = arith.constant 0 : index
      %c0_75 = arith.constant 0 : index
      %124 = vector.load %arg19[%c0_74, %c0_75] : memref<8x32xf32, #tpu.memory_space<vmem>>, vector<8x8xf32>
      %125 = vector.extract_strided_slice %123 {offsets = [0, 0], sizes = [8, 1], strides = [1, 1]} : vector<8x4xf32> to vector<8x1xf32>
      %126 = vector.broadcast %125 : vector<8x1xf32> to vector<8x8xf32>
      %127 = arith.mulf %124, %126 : vector<8x8xf32>
      %c0_76 = arith.constant 0 : index
      %c0_77 = arith.constant 0 : index
      %128 = vector.load %arg19[%c0_76, %c0_77] : memref<8x32xf32, #tpu.memory_space<vmem>>, vector<8x8xf32>
      tpu.vector_store %arg19[%c0_76, %c0_77], %127 {strides = array<i32>} : memref<8x32xf32, #tpu.memory_space<vmem>>, vector<8x8xf32>,
      %c0_78 = arith.constant 0 : index
      %c8_79 = arith.constant 8 : index
      %129 = vector.load %arg19[%c0_78, %c8_79] : memref<8x32xf32, #tpu.memory_space<vmem>>, vector<8x8xf32>
      %130 = vector.extract_strided_slice %123 {offsets = [0, 1], sizes = [8, 1], strides = [1, 1]} : vector<8x4xf32> to vector<8x1xf32>
      %131 = vector.broadcast %130 : vector<8x1xf32> to vector<8x8xf32>
      %132 = arith.mulf %129, %131 : vector<8x8xf32>
      %c0_80 = arith.constant 0 : index
      %c8_81 = arith.constant 8 : index
      %133 = vector.load %arg19[%c0_80, %c8_81] : memref<8x32xf32, #tpu.memory_space<vmem>>, vector<8x8xf32>
      tpu.vector_store %arg19[%c0_80, %c8_81], %132 {strides = array<i32>} : memref<8x32xf32, #tpu.memory_space<vmem>>, vector<8x8xf32>,
      %c0_82 = arith.constant 0 : index
      %c16_83 = arith.constant 16 : index
      %134 = vector.load %arg19[%c0_82, %c16_83] : memref<8x32xf32, #tpu.memory_space<vmem>>, vector<8x8xf32>
      %135 = vector.extract_strided_slice %123 {offsets = [0, 2], sizes = [8, 1], strides = [1, 1]} : vector<8x4xf32> to vector<8x1xf32>
      %136 = vector.broadcast %135 : vector<8x1xf32> to vector<8x8xf32>
      %137 = arith.mulf %134, %136 : vector<8x8xf32>
      %c0_84 = arith.constant 0 : index
      %c16_85 = arith.constant 16 : index
      %138 = vector.load %arg19[%c0_84, %c16_85] : memref<8x32xf32, #tpu.memory_space<vmem>>, vector<8x8xf32>
      tpu.vector_store %arg19[%c0_84, %c16_85], %137 {strides = array<i32>} : memref<8x32xf32, #tpu.memory_space<vmem>>, vector<8x8xf32>,
      %c0_86 = arith.constant 0 : index
      %c24_87 = arith.constant 24 : index
      %139 = vector.load %arg19[%c0_86, %c24_87] : memref<8x32xf32, #tpu.memory_space<vmem>>, vector<8x8xf32>
      %140 = vector.extract_strided_slice %123 {offsets = [0, 3], sizes = [8, 1], strides = [1, 1]} : vector<8x4xf32> to vector<8x1xf32>
      %141 = vector.broadcast %140 : vector<8x1xf32> to vector<8x8xf32>
      %142 = arith.mulf %139, %141 : vector<8x8xf32>
      %c0_88 = arith.constant 0 : index
      %c24_89 = arith.constant 24 : index
      %143 = vector.load %arg19[%c0_88, %c24_89] : memref<8x32xf32, #tpu.memory_space<vmem>>, vector<8x8xf32>
      tpu.vector_store %arg19[%c0_88, %c24_89], %142 {strides = array<i32>} : memref<8x32xf32, #tpu.memory_space<vmem>>, vector<8x8xf32>,
      %c0_90 = arith.constant 0 : index
      %c0_91 = arith.constant 0 : index
      %144 = vector.load %arg19[%c0_90, %c0_91] : memref<8x32xf32, #tpu.memory_space<vmem>>, vector<8x32xf32>
      %145 = arith.truncf %144 : vector<8x32xf32> to vector<8x32xbf16>
      %c0_92 = arith.constant 0 : index
      %c0_93 = arith.constant 0 : index
      %146 = vector.load %arg12[%c0_92, %c0_93] : memref<32x32xbf16, #tpu.memory_space<vmem>>, vector<32x32xbf16>
      %cst_94 = arith.constant dense<0.000000e+00> : vector<8x32xf32>
      %147 = tpu.matmul %145, %146, %cst_94 {dimension_numbers = #tpu.dot_dimension_numbers<[1], [0], [0], [1], [0, 0, 1, 1], [], []>} : vector<8x32xbf16>, vector<32x32xbf16>, vector<8x32xf32> -> vector<8x32xf32>
      %c0_95 = arith.constant 0 : index
      %c0_96 = arith.constant 0 : index
      %148 = vector.load %arg13[%c0_95, %c0_96] : memref<1x32xf32, #tpu.memory_space<vmem>>, vector<1x32xf32>
      %149 = vector.broadcast %148 : vector<1x32xf32> to vector<8x32xf32>
      %150 = arith.addf %147, %149 : vector<8x32xf32>
      %c0_97 = arith.constant 0 : index
      %c0_98 = arith.constant 0 : index
      %151 = vector.load %arg16[%c0_97, %c0_98] : memref<8x32xf32, #tpu.memory_space<vmem>>, vector<8x32xf32>
      %152 = arith.addf %150, %151 : vector<8x32xf32>
      %c0_99 = arith.constant 0 : index
      %c0_100 = arith.constant 0 : index
      %c0_101 = arith.constant 0 : index
      %153 = vector.load %arg14[%c0_99, %c0_100, %c0_101] : memref<1x8x32xf32, #tpu.memory_space<vmem>>, vector<1x8x32xf32>
      %154 = vector.shape_cast %153 : vector<1x8x32xf32> to vector<8x32xf32>
      %155 = vector.shape_cast %152 : vector<8x32xf32> to vector<1x8x32xf32>
      tpu.vector_store %arg14[%c0_99, %c0_100, %c0_101], %155 {strides = array<i32>} : memref<1x8x32xf32, #tpu.memory_space<vmem>>, vector<1x8x32xf32>,
    } else {
    }
    return
  }
  func.func @transform_0(%arg0: i32, %arg1: i32, %arg2: i32) -> (i32, i32, i32) {
    %c0_i32 = arith.constant 0 : i32
    %c0_i32_0 = arith.constant 0 : i32
    return %arg0, %arg1, %c0_i32 : i32, i32, i32
  }
  func.func @transform_1(%arg0: i32, %arg1: i32, %arg2: i32) -> (i32, i32, i32) {
    %c0_i32 = arith.constant 0 : i32
    %c0_i32_0 = arith.constant 0 : i32
    return %arg0, %arg2, %c0_i32 : i32, i32, i32
  }
  func.func @transform_2(%arg0: i32, %arg1: i32, %arg2: i32) -> (i32, i32, i32) {
    %c0_i32 = arith.constant 0 : i32
    %c0_i32_0 = arith.constant 0 : i32
    return %arg0, %arg2, %c0_i32 : i32, i32, i32
  }
  func.func @transform_3(%arg0: i32, %arg1: i32, %arg2: i32) -> (i32, i32) {
    %c0_i32 = arith.constant 0 : i32
    %c0_i32_0 = arith.constant 0 : i32
    %c0_i32_1 = arith.constant 0 : i32
    return %c0_i32, %c0_i32_0 : i32, i32
  }
  func.func @transform_4(%arg0: i32, %arg1: i32, %arg2: i32) -> (i32, i32) {
    %c0_i32 = arith.constant 0 : i32
    %c0_i32_0 = arith.constant 0 : i32
    %c0_i32_1 = arith.constant 0 : i32
    return %c0_i32, %c0_i32_0 : i32, i32
  }
  func.func @transform_5(%arg0: i32, %arg1: i32, %arg2: i32) -> (i32, i32) {
    %c0_i32 = arith.constant 0 : i32
    %c0_i32_0 = arith.constant 0 : i32
    %c0_i32_1 = arith.constant 0 : i32
    return %c0_i32, %c0_i32_0 : i32, i32
  }
  func.func @transform_6(%arg0: i32, %arg1: i32, %arg2: i32) -> (i32, i32) {
    %c0_i32 = arith.constant 0 : i32
    %c0_i32_0 = arith.constant 0 : i32
    %c0_i32_1 = arith.constant 0 : i32
    return %c0_i32, %c0_i32_0 : i32, i32
  }
  func.func @transform_7(%arg0: i32, %arg1: i32, %arg2: i32) -> (i32, i32) {
    %c0_i32 = arith.constant 0 : i32
    %c0_i32_0 = arith.constant 0 : i32
    %c0_i32_1 = arith.constant 0 : i32
    return %c0_i32, %c0_i32_0 : i32, i32
  }
  func.func @transform_8(%arg0: i32, %arg1: i32, %arg2: i32) -> (i32, i32) {
    %c0_i32 = arith.constant 0 : i32
    %c0_i32_0 = arith.constant 0 : i32
    %c0_i32_1 = arith.constant 0 : i32
    return %c0_i32, %c0_i32_0 : i32, i32
  }
  func.func @transform_9(%arg0: i32, %arg1: i32, %arg2: i32) -> (i32, i32) {
    %c0_i32 = arith.constant 0 : i32
    %c0_i32_0 = arith.constant 0 : i32
    %c0_i32_1 = arith.constant 0 : i32
    return %c0_i32, %c0_i32_0 : i32, i32
  }
  func.func @transform_10(%arg0: i32, %arg1: i32, %arg2: i32) -> (i32, i32) {
    %c0_i32 = arith.constant 0 : i32
    %c0_i32_0 = arith.constant 0 : i32
    %c0_i32_1 = arith.constant 0 : i32
    return %c0_i32, %c0_i32_0 : i32, i32
  }
  func.func @transform_11(%arg0: i32, %arg1: i32, %arg2: i32) -> (i32, i32, i32) {
    %c0_i32 = arith.constant 0 : i32
    %c0_i32_0 = arith.constant 0 : i32
    return %arg0, %arg1, %c0_i32 : i32, i32, i32
  }
}

</mosaic_0001>

<bundles_post_ra>
// kernel: tpu_custom_call.1
= control target key start
LH: loop header
LB: loop body
LE: loop exit
PB: predicated region body
PF: predicated region fallthrough
CT: control target
= control target key end

     0   :  { %s3111_s0 = inlined_call_operand.hbm [shape: f32[2,16,32], index: 0, kind: input, shape index: {}]   ;;  %s3112_s1 = inlined_call_operand.hbm [shape: bf16[2,32,32], index: 1, kind: input, shape index: {}]   ;;  %s3113_s2 = inlined_call_operand.hbm [shape: bf16[2,32,32], index: 2, kind: input, shape index: {}]   ;;  %s3114_s3 = inlined_call_operand.hbm [shape: f32[1,32], index: 3, kind: input, shape index: {}]   ;;  %s3115_s4 = inlined_call_operand.hbm [shape: f32[1,32], index: 4, kind: input, shape index: {}]   ;;  %s3116_s5 = inlined_call_operand.hbm [shape: bf16[32,32], index: 5, kind: input, shape index: {}]   ;;  %s3117_s6 = inlined_call_operand.hbm [shape: f32[1,32], index: 6, kind: input, shape index: {}]   ;;  %s3118_s7 = inlined_call_operand.hbm [shape: bf16[32,32], index: 7, kind: input, shape index: {}]   ;;  %s3119_s8 = inlined_call_operand.hbm [shape: f32[1,32], index: 8, kind: input, shape index: {}]   ;;  %s3120_s9 = inlined_call_operand.vmem [shape: bf16[32,32], index: 9, kind: input, shape index: {}]   ;;  %s3121_s10 = inlined_call_operand.vmem [shape: f32[1,32], index: 10, kind: input, shape index: {}]   ;;  %s3122_s11 = inlined_call_operand.hbm [shape: f32[2,16,32], index: 11, kind: output, shape index: {}]  }
   0x1   :  { %3153 = sst [smem:[#allocation44_spill]] %s3111_s0 }
   0x2   :  { %3154 = sst [smem:[#allocation45_spill]] %s3112_s1 }
   0x3   :  { %3155 = sst [smem:[#allocation46_spill]] %s3113_s2 }
   0x4   :  { %3156 = sst [smem:[#allocation47_spill]] %s3114_s3 }
   0x5   :  { %3157 = sst [smem:[#allocation48_spill]] %s3115_s4 }
   0x6   :  { %3158 = sst [smem:[#allocation49_spill]] %s3116_s5 }
   0x7   :  { %3159 = sst [smem:[#allocation50_spill]] %s3117_s6 }
   0x8   :  { %3160 = sst [smem:[#allocation51_spill]] %s3118_s7 }
   0x9   :  { %3161 = sst [smem:[#allocation52_spill]] %s3119_s8 }
   0xa   :  { %3162 = sst [smem:[#allocation53_spill]] %s3120_s9 }
   0xb   :  { %3163 = sst [smem:[#allocation54_spill]] %s3121_s10 }
   0xc   :  { %3164 = sst [smem:[#allocation55_spill]] %s3122_s11 }
   0xd   :  { %16 = vsyncpa [#allocation8], 0 }
   0xe   :  { %18 = vsyncpa [#allocation8 + $0x1], 0 }
   0xf   :  { %19 = vsyncpa [#allocation11], 0 }
  0x10   :  { %21 = vsyncpa [#allocation11 + $0x1], 0 }
  0x11   :  { %22 = vsyncpa [#allocation14], 0 }
  0x12   :  { %23 = vsyncpa [#allocation17], 0 }
  0x13   :  { %24 = vsyncpa [#allocation20], 0 }
  0x14   :  { %25 = vsyncpa [#allocation9], 0 }
  0x15   :  { %27 = vsyncpa [#allocation9 + $0x1], 0  ;;  %s2552_s17 = smov 0   ;;  %s2554_s18 = smov 0  }
  0x16   :  { %s2556_s19 = smov 0   ;;  %s2558_s20 = smov 0  }
  0x17   :  { %s2560_s21 = smov 0   ;;  %s2562_s22 = smov 0  }
  0x18   :  { %s2564_s23 = smov 0   ;;  %s2566_s24 = smov 0  }
  0x19   :  { %s2568_s25 = smov 0   ;;  %s2570_s26 = smov 0  }
  0x1a   :  { %s2572_s27 = smov 0   ;;  %s2574_s28 = smov 0  }
  0x1b   :  { %s2576_s29 = smov 0  }
  0x1c LB: > { %3165 = sst [smem:[#allocation29_spill]] %s2413_s18  ;;  %s2618_s30 = sadd.s32 4294967295, %s2457_s29   ;;  %s2457_s29 = sphi %s2576_s29, %s33_s29   ;;  %s2453_s28 = sphi %s2574_s28, %s3254_s28   ;;  %s2449_s27 = sphi %s2572_s27, %s3253_s27   ;;  %s2445_s26 = sphi %s2570_s26, %s3243_s26   ;;  %s2441_s25 = sphi %s2568_s25, %s3252_s25   ;;  %s2437_s24 = sphi %s2566_s24, %s3251_s24   ;;  %s2433_s23 = sphi %s2564_s23, %s3242_s23   ;;  %s2429_s22 = sphi %s2562_s22, %s3250_s22   ;;  %s2425_s21 = sphi %s2560_s21, %s3249_s21   ;;  %s2421_s20 = sphi %s2558_s20, %s3241_s20   ;;  %s2417_s19 = sphi %s2556_s19, %s3248_s19   ;;  %s2413_s18 = sphi %s2554_s18, %s3240_s18   ;;  %s2409_s17 = sphi %s2552_s17, %s3247_s17  }
  0x1d   : > { %3166 = sst [smem:[#allocation30_spill]] %s2417_s19  ;;  %p1653_p0 = scmp.ge.s32.totalorder %s2457_s29, 1 }
  0x1e   : > { %3167 = sst [smem:[#allocation31_spill]] %s2421_s20  ;;  %p3141_p1 = scmp.eq.s32.totalorder %s2618_s30, 0 }
  0x1f   : > { %3168 = sst [smem:[#allocation32_spill]] %s2425_s21  ;;  %p337_p2 = scmp.lt.s32.totalorder %s2457_s29, 9 }
  0x20   : > { %3169 = sst [smem:[#allocation33_spill]] %s2433_s23  ;;  %s2459_s13 = smov [#allocation13]  }
  0x21   : > { %3170 = sst [smem:[#allocation34_spill]] %s2437_s24  ;;  %p2623_p3 = pnand %p1653_p0, %p337_p2 }
  0x22   : > { %3171 = sst [smem:[#allocation35_spill]] %s2441_s25  ;;  %s350_s14 = sshll.u32 %s2459_s13, 4  ;;  %s351_s14 = int_to_ptr.vmem [resolvable:$true] %s350_s14 }
  0x23   : > { %3172 = sst [smem:[#allocation36_spill]] %s2445_s26  ;;  %p1843_p4 = pneg %p2623_p3 }
  0x24   : > { %3173 = sst [smem:[#allocation37_spill]] %s2618_s30  ;;  %s2460_s15 = smov [#allocation16]  }
  0x25   : > { %s3174_s12 = scalar_select %p2623_p3, 1, 0 }
  0x26   : > { %s371_s16 = sshll.u32 %s2460_s15, 4  ;;  %p2631_p5 = pnand %p1843_p4, %p3141_p1  ;;  %s2635_s16 = int_to_ptr.vmem [resolvable:$true] %s371_s16 }
  0x27   : > { %3175 = sst [smem:[#allocation38_spill]] %s3174_s12  ;;  %s2461_s24 = smov [#allocation19]  }
  0x28   : > { %s395_s25 = sshll.u32 %s2461_s24, 4  ;;  %p2639_p6 = pneg %p2631_p5  ;;  %s396_s25 = int_to_ptr.vmem [resolvable:$true] %s395_s25 }
  0x29   : > { %s2076_s13 = scalar_lea.vmem %s351_s14, 16  ;;  %s2083_s15 = scalar_lea.vmem %s351_s14, 32 }
  0x2a   : > { %p2077_p7 = scmp.ne.s32.totalorder %s351_s14, %s2076_s13  ;;  %p2084_p10 = scmp.lt.s32.totalorder %s351_s14, %s351_s14 }
  0x2b   : > { %p2085_p11 = scmp.lt.s32.totalorder %s2083_s15, %s2076_s13 }
  0x2c   : > { %p2079_p8 = pnand %p2077_p7, %p2639_p6 }
  0x2d   : > { %p2086_p12 = por %p2085_p11, %p2084_p10 }
  0x2e   : > { %p2080_p9 = pneg %p2079_p8 }
  0x30   : > { %p2087_p13 = pnand %p2086_p12, %p2080_p9 }
  0x32   : > { %2090 = shalt.err (!%p2087_p13)
}
  0x33   : > { %s3178_s3 = sld [smem:[#allocation47_spill]]  ;;  %s2102_s23 = scalar_lea.vmem %s2635_s16, 256 }
  0x34   : > { %p2103_p0 = scmp.ne.s32.totalorder %s2635_s16, %s2102_s23  ;;  %p2110_p7 = scmp.lt.s32.totalorder %s2635_s16, %s2635_s16 }
  0x35   : > { %p2111_p8 = scmp.lt.s32.totalorder %s2102_s23, %s2102_s23 }
  0x36   : > { %p2105_p2 = pnand %p2103_p0, %p2639_p6 }
  0x37   : > { %p2112_p9 = por %p2111_p8, %p2110_p7 }
  0x38   : > { %p2106_p4 = pneg %p2105_p2 }
  0x39   : > { %1846 = dma.hbm_to_vmem [thread:$0]  (!%p2631_p5), %s3178_s3, 16, %s351_s14, [#allocation14]  }
  0x3a   : > { %p2113_p10 = pnand %p2112_p9, %p2106_p4 }
  0x3c   : > { %2116 = shalt.err (!%p2113_p10)
}
  0x3d   : > { %s3125_s13 = smov 64   ;;  %s3127_s9 = smov 4  }
  0x3e   : > { %s3179_s5 = sld [smem:[#allocation49_spill]]  ;;  %s2128_s24 = scalar_lea.vmem %s396_s25, 256 }
  0x3f   : > { %p2129_p11 = scmp.ne.s32.totalorder %s396_s25, %s2128_s24  ;;  %p2136_p0 = scmp.lt.s32.totalorder %s396_s25, %s396_s25 }
  0x40   : > { %p2137_p2 = scmp.lt.s32.totalorder %s2128_s24, %s2128_s24 }
  0x41   : > { %p2131_p12 = pnand %p2129_p11, %p2639_p6 }
  0x42   : > { %p2138_p4 = por %p2137_p2, %p2136_p0 }
  0x43   : > { %p2132_p13 = pneg %p2131_p12 }
  0x44   : > { %1852 = dma.hbm_to_vmem [thread:$0]  (!%p2631_p5), %s3179_s5, 256, %s2635_s16, [#allocation17], %s3125_s13, %s3125_s13, %s3127_s9  }
  0x45   : > { %p2139_p7 = pnand %p2138_p4, %p2132_p13 }
  0x47   : > { %2142 = shalt.err (!%p2139_p7)
}
  0x48   : > { %s3180_s7 = sld [smem:[#allocation51_spill]]  ;;  %s45_s16 = sadd.s32 1, %s2445_s26 }
  0x49   : > { %p2676_p8 = scmp.ge.s32.totalorder %s45_s16, 2  ;;  %p3140_p9 = scmp.eq.s32.totalorder %s2457_s29, 0 }
  0x4a   : > { %p96_p10 = scmp.ne.s32.totalorder %s2417_s19, %s2413_s18  ;;  %p102_p11 = scmp.ne.s32.totalorder %s2413_s18, %s2409_s17 }
  0x4b   : > { %s3256_s16 = smov (%p2676_p8, %s45_s16), 0  ;;  %p3139_p13 = scmp.lt.s32.totalorder %s2457_s29, 8 }
  0x4c   : > { %3182 = sst [smem:[#allocation39_spill]] %s3256_s16  ;;  %p2692_p12 = por %p96_p10, %p3140_p9 }
  0x4d   : > { %p2699_p0 = por %p102_p11, %p3141_p1  ;;  %s446_s24 = sand.u32 1, %s2457_s29  }
  0x4e   : > { %1858 = dma.hbm_to_vmem [thread:$0]  (!%p2631_p5), %s3180_s7, 256, %s396_s25, [#allocation20], %s3125_s13, %s3125_s13, %s3127_s9  }
  0x4f   : > { %s3184_s25 = scalar_select %p2699_p0, 1, 0 }
  0x50   : > { %s448_s23 = sand.u32 1, %s2417_s19   ;;  %s1665_s17 = sshll.u32 %s2445_s26, 1 }
  0x51   : > { %3185 = sst [smem:[#allocation40_spill]] %s3184_s25  ;;  %s2705_s13 = sshll.u32 %s448_s23, 3 }
  0x52   : > { %s1666_s3 = sshll.u32 %s2453_s28, 2  ;;  %s450_s5 = scalar_lea.vmem [#allocation10], %s2705_s13 }
  0x53   : > { %s456_s9 = sadd.s32 %s1666_s3, %s1665_s17  ;;  %s459_s7 = sshll.u32 %s450_s5, 4  ;;  %s460_s7 = int_to_ptr.vmem [resolvable:$true] %s459_s7 }
  0x54   : > { %s1667_s18 = sshll.u32 %s456_s9, 6  ;;  %s3186_s1 = sld [smem:[#allocation45_spill]] }
  0x55   : > { %p2717_p2 = pnand %p3139_p13, %p2692_p12  ;;  %s3188_s2 = sld [smem:[#allocation46_spill]] }
  0x56   : > { %s2728_s5 = scalar_lea.sflag [#allocation11], %s446_s24  ;;  %s2156_s0 = scalar_lea.vmem %s460_s7, 128 }
  0x57   : > { %s3187_s25 = scalar_select %p2717_p2, 1, 0 }
  0x58   : > { %p3142_p4 = pneg %p2717_p2  ;;  %p2157_p7 = scmp.ne.s32.totalorder %s460_s7, %s2156_s0 }
  0x59   : > { %s2464_s12 = smov [#allocation10]  }
  0x5a   : > { %s458_s30 = scalar_lea.hbm %s3186_s1, %s1667_s18  ;;  %p2159_p10 = pnand %p2157_p7, %p3142_p4 }
  0x5b   : > { %s2726_s3 = scalar_lea.hbm %s3188_s2, %s1667_s18  ;;  %s2161_s9 = sshll.u32 %s2464_s12, 4  ;;  %s2162_s9 = int_to_ptr.vmem [resolvable:$false] %s2161_s9 }
  0x5c   : > { %p2160_p11 = pneg %p2159_p10  ;;  %s2163_s15 = scalar_lea.vmem %s2162_s9, 256 }
  0x5d   : > { %p2164_p12 = scmp.lt.s32.totalorder %s460_s7, %s2162_s9  ;;  %p2165_p13 = scmp.lt.s32.totalorder %s2163_s15, %s2156_s0 }
  0x5f   : > { %p2166_p9 = por %p2165_p13, %p2164_p12 }
  0x61   : > { %p2167_p1 = pnand %p2166_p9, %p2160_p11 }
  0x63   : > { %2170 = shalt.err (!%p2167_p1)
}
  0x64   : > { %s3189_s18 = smov 4   ;;  %s3190_s19 = smov 64  }
  0x65   : > { %1868 = dma.hbm_to_vmem [thread:$0]  (!%p2717_p2), %s458_s30, 128, %s460_s7, %s2728_s5, %s3190_s19, %s3190_s19, %s3189_s18  }
  0x66   : > { %s473_s21 = scalar_lea.vmem [#allocation12], %s2705_s13  ;;  %s2465_s17 = smov [#allocation15]  }
  0x67   : > { %s2742_s24 = sshll.u32 %s473_s21, 4  ;;  %s361_s12 = sshll.u32 %s2465_s17, 4  ;;  %s362_s12 = int_to_ptr.vmem [resolvable:$true] %s361_s12  ;;  %s2766_s24 = int_to_ptr.vmem [resolvable:$true] %s2742_s24 }
  0x68   : > { %s2466_s9 = smov [#allocation18]   ;;  %s2182_s15 = scalar_lea.vmem %s362_s12, 16 }
  0x69   : > { %s385_s0 = sshll.u32 %s2466_s9, 4  ;;  %p2183_p9 = scmp.ne.s32.totalorder %s362_s12, %s2182_s15  ;;  %s386_s0 = int_to_ptr.vmem [resolvable:$true] %s385_s0 }
  0x6a   : > { %s2189_s23 = scalar_lea.vmem %s362_s12, 32  ;;  %p2190_p7 = scmp.lt.s32.totalorder %s362_s12, %s362_s12 }
  0x6b   : > { %p2185_p1 = pnand %p2183_p9, %p2639_p6  ;;  %p2191_p10 = scmp.lt.s32.totalorder %s2189_s23, %s2182_s15 }
  0x6d   : > { %p2186_p13 = pneg %p2185_p1  ;;  %p2192_p11 = por %p2191_p10, %p2190_p7 }
  0x6f   : > { %p2193_p12 = pnand %p2192_p11, %p2186_p13 }
  0x71   : > { %2196 = shalt.err (!%p2193_p12)
}
  0x72   : > { %s3191_s4 = sld [smem:[#allocation48_spill]]  ;;  %s2208_s13 = scalar_lea.vmem %s386_s0, 16 }
  0x73   : > { %p2209_p4 = scmp.ne.s32.totalorder %s386_s0, %s2208_s13  ;;  %s2215_s21 = scalar_lea.vmem %s386_s0, 32 }
  0x74   : > { %p2216_p1 = scmp.lt.s32.totalorder %s386_s0, %s386_s0  ;;  %p2217_p3 = scmp.lt.s32.totalorder %s2215_s21, %s2208_s13 }
  0x75   : > { %p2211_p0 = pnand %p2209_p4, %p2639_p6 }
  0x76   : > { %p2218_p2 = por %p2217_p3, %p2216_p1 }
  0x77   : > { %p2212_p9 = pneg %p2211_p0 }
  0x78   : > { %1849 = dma.hbm_to_vmem [thread:$0]  (!%p2631_p5), %s3191_s4, 16, %s362_s12, [#allocation14]  }
  0x79   : > { %p2219_p7 = pnand %p2218_p2, %p2212_p9 }
  0x7b   : > { %2222 = shalt.err (!%p2219_p7)
}
  0x7c   : > { %s3192_s6 = sld [smem:[#allocation50_spill]]  ;;  %s2467_s12 = smov [#allocation21]  }
  0x7d   : > { %s409_s9 = sshll.u32 %s2467_s12, 4  ;;  %s410_s9 = int_to_ptr.vmem [resolvable:$true] %s409_s9 }
  0x7e   : > { %s2234_s15 = scalar_lea.vmem %s410_s9, 16  ;;  %s2241_s7 = scalar_lea.vmem %s410_s9, 32 }
  0x7f   : > { %p2235_p13 = scmp.ne.s32.totalorder %s410_s9, %s2234_s15  ;;  %p2242_p10 = scmp.lt.s32.totalorder %s410_s9, %s410_s9 }
  0x80   : > { %p2243_p3 = scmp.lt.s32.totalorder %s2241_s7, %s2234_s15 }
  0x81   : > { %p2237_p0 = pnand %p2235_p13, %p2639_p6 }
  0x82   : > { %1855 = dma.hbm_to_vmem [thread:$0]  (!%p2631_p5), %s3192_s6, 16, %s386_s0, [#allocation17]  }
  0x83   : > { %p2238_p4 = pneg %p2237_p0  ;;  %p2244_p2 = por %p2243_p3, %p2242_p10 }
  0x85   : > { %p2245_p11 = pnand %p2244_p2, %p2238_p4 }
  0x87   : > { %2248 = shalt.err (!%p2245_p11)
}
  0x88   : > { %s3193_s8 = sld [smem:[#allocation52_spill]]  ;;  %s48_s11 = sadd.s32 1, %s2449_s27 }
  0x89   : > { %s3194_s10 = sld [smem:[#allocation32_spill]]  ;;  %s3258_s11 = smov (!%p2676_p8, %s48_s11), %s2449_s27 }
  0x8a   : > { %s3195_s0 = sld [smem:[#allocation37_spill]]  ;;  %s1652_s21 = sadd.s32 4294967294, %s2457_s29  }
  0x8b   : > { %s52_s23 = sadd.s32 1, %s2453_s28  ;;  %p50_p6 = scmp.ge.s32.totalorder %s3258_s11, 2 }
  0x8c   : > { %s61_s17 = sadd.s32 1, %s2429_s22  ;;  %s3198_s14 = sld [smem:[#allocation30_spill]] }
  0x8d   : > { %s3260_s11 = smov (%p50_p6, %s3258_s11), 0  ;;  %s3262_s23 = smov (!%p50_p6, %s52_s23), %s2453_s28 }
  0x8e   : > { %1861 = dma.hbm_to_vmem [thread:$0]  (!%p2631_p5), %s3193_s8, 16, %s410_s9, [#allocation20]  }
  0x8f   : > { %p74_p12 = scmp.ne.s32.totalorder %s3194_s10, %s2421_s20  ;;  %3196 = sst [smem:[#allocation41_spill]] %s3260_s11 }
  0x90   : > { %p324_p9 = scmp.eq.s32.totalorder %s3195_s0, 7  ;;  %s57_s12 = ssub.s32 %s2449_s27, %s3260_s11 }
  0x91   : > { %p68_p5 = scmp.ne.s32.totalorder %s2429_s22, %s3194_s10  ;;  %p54_p8 = scmp.ge.s32.totalorder %s3262_s23, 2 }
  0x92   : > { %p3197_p1 = scmp.eq.s32.totalorder %s3195_s0, 0  ;;  %p330_p0 = scmp.eq.s32.totalorder %s1652_s21, 7 }
  0x93   : > { %p2791_p13 = por %p324_p9, %p68_p5  ;;  %s3264_s23 = smov (%p54_p8, %s3262_s23), 0 }
  0x94   : > { %p2787_p7 = por %p3197_p1, %p74_p12  ;;  %3201 = sst [smem:[#allocation42_spill]] %s3264_s23 }
  0x95   : > { %p3202_p4 = scmp.eq.s32.totalorder %s2457_s29, 0  ;;  %p2803_p3 = por %p330_p0, %p74_p12 }
  0x96   : > { %s56_s13 = ssub.s32 %s2453_s28, %s3264_s23  ;;  %s426_s10 = sand.u32 1, %s2429_s22  }
  0x97   : > { %p2799_p10 = por %p3202_p4, %p68_p5  ;;  %s58_s0 = sor.u32 %s57_s12, %s56_s13 }
  0x98   : > { %s3204_s30 = scalar_select %p2803_p3, 1, 0 }
  0x99   : > { %s3206_s1 = ssub.s32 %s2445_s26, %s3256_s16  ;;  %p59_p2 = scmp.eq.s32.totalorder %s58_s0, 0 }
  0x9a   : > { %3205 = sst [smem:[#allocation43_spill]] %s3204_s30  ;;  %s86_s21 = sor.u32 %s3206_s1, %s56_s13 }
  0x9b   : > { %p87_p11 = scmp.eq.s32.totalorder %s86_s21, 0  ;;  %s1661_s2 = sshll.u32 %s426_s10, 3 }
  0x9c   : > { %s1662_s4 = sshll.u32 %s2453_s28, 1  ;;  %s3207_s8 = sadd.s32 1, %s3198_s14 }
  0x9d   : > { %s2817_s6 = scalar_select %p59_p2, %s2429_s22, %s61_s17  }
  0x9e   : > { %s3266_s14 = smov (!%p87_p11, %s3198_s14), %s3207_s8  ;;  %s435_s23 = sadd.s32 %s2449_s27, %s1662_s4 }
  0x9f   : > { %s1663_s11 = sshll.u32 %s435_s23, 7  ;;  %s430_s30 = scalar_lea.vmem [#allocation7], %s1661_s2 }
  0xa0   : > { %s439_s20 = sshll.u32 %s430_s30, 4  ;;  %s3208_s26 = sld [smem:[#allocation44_spill]]  ;;  %s2830_s20 = int_to_ptr.vmem [resolvable:$true] %s439_s20 }
  0xa1   : > { %p3209_p6 = scmp.lt.s32.totalorder %s2457_s29, 8  ;;  %s2262_s8 = scalar_lea.vmem %s2766_s24, 128 }
  0xa2   : > { %p2263_p9 = scmp.ne.s32.totalorder %s2766_s24, %s2262_s8  ;;  %p3211_p5 = scmp.ne.s32.totalorder %s3187_s25, 0 }
  0xa3   : > { %p2836_p12 = pnand %p3209_p6, %p2799_p10  ;;  %s2468_s2 = smov [#allocation12]  }
  0xa4   : > { %p3212_p8 = pneg %p3211_p5  ;;  %s2267_s4 = sshll.u32 %s2468_s2, 4  ;;  %s2268_s4 = int_to_ptr.vmem [resolvable:$false] %s2267_s4 }
  0xa5   : > { %s2269_s16 = scalar_lea.vmem %s2268_s4, 256  ;;  %p2270_p4 = scmp.lt.s32.totalorder %s2766_s24, %s2268_s4 }
  0xa6   : > { %s2828_s1 = scalar_lea.hbm %s3208_s26, %s1663_s11  ;;  %p2265_p1 = pnand %p2263_p9, %p3212_p8 }
  0xa7   : > { %p2271_p2 = scmp.lt.s32.totalorder %s2269_s16, %s2262_s8 }
  0xa8   : > { %p2266_p0 = pneg %p2265_p1 }
  0xa9   : > { %p2272_p11 = por %p2271_p2, %p2270_p4 }
  0xab   : > { %p2273_p3 = pnand %p2272_p11, %p2266_p0 }
  0xad   : > { %2276 = shalt.err (!%p2273_p3)
}
  0xae   : > { %1871 = dma.hbm_to_vmem [thread:$0]  (!%p3211_p5), %s2726_s3, 128, %s2766_s24, %s2728_s5, %s3190_s19, %s3190_s19, %s3189_s18  }
  0xaf   : > { %s427_s26 = scalar_lea.sflag [#allocation8], %s426_s10  ;;  %p2279_p10 = pneg %p2836_p12 }
  0xb0   : > { %s2290_s11 = scalar_lea.vmem %s2830_s20, 128  ;;  %s2469_s25 = smov [#allocation7]  }
  0xb1   : > { %p2291_p3 = scmp.ne.s32.totalorder %s2830_s20, %s2290_s11  ;;  %s2295_s23 = sshll.u32 %s2469_s25, 4  ;;  %s2296_s23 = int_to_ptr.vmem [resolvable:$false] %s2295_s23 }
  0xb2   : > { %s2297_s7 = scalar_lea.vmem %s2296_s23, 256  ;;  %p2298_p8 = scmp.lt.s32.totalorder %s2830_s20, %s2296_s23 }
  0xb3   : > { %p2293_p6 = pnand %p2291_p3, %p2279_p10  ;;  %p2299_p1 = scmp.lt.s32.totalorder %s2297_s7, %s2290_s11 }
  0xb5   : > { %p2294_p9 = pneg %p2293_p6  ;;  %p2300_p0 = por %p2299_p1, %p2298_p8 }
  0xb7   : > { %p2301_p4 = pnand %p2300_p0, %p2294_p9 }
  0xb9   : > { %2304 = shalt.err (!%p2301_p4)
}
  0xba   : > { %1865 = dma.hbm_to_vmem [thread:$0]  (!%p2836_p12), %s2828_s1, 128, %s2830_s20, %s427_s26  }
  0xbb   : > { %s3213_s3 = sld [smem:[#allocation38_spill]] }
  0xc1   : > { %p3214_p5 = scmp.ne.s32.totalorder %s3213_s3, 0 }
  0xc2   : > { %s3215_s5 = sld [smem:[#allocation32_spill]] (!%p3214_p5) }
  0xc3   : > { %494 = sbr.rel (%p3214_p5) target bundleno = 2516 (0x9d4), region = 64 }
  0xc8   : > { %s2868_s18 = sand.u32 1, %s3215_s5  }
  0xc9   : > { %s1673_s19 = sshll.u32 %s2868_s18, 3  ;;  %s497_s24 = scalar_lea.sflag [#allocation8], %s2868_s18 }
  0xca   : > { %s500_s30 = scalar_lea.vmem [#allocation7], %s1673_s19 }
  0xcb   : > { %2384 = dma.done.wait (%p2787_p7), %s497_s24, 128  }
  0xcc   : > { %2386 = vsyncadd (%p2787_p7), %s497_s24, 4294967168  ;;  %s3216_s13 = sld [smem:[#allocation37_spill]] }
  0xcd   : > { %s3217_s10 = sld [smem:[#allocation29_spill]] }
  0xce   : > { %s3218_s20 = sld [smem:[#allocation40_spill]] }
  0xd2   : > { %s505_s0 = sand.u32 1, %s3216_s13  }
  0xd3   : > { %s507_s21 = sand.u32 1, %s3217_s10   ;;  %s506_s1 = scalar_lea.sflag [#allocation11], %s505_s0 }
  0xd4   : > { %s2878_s12 = sshll.u32 %s507_s21, 3  ;;  %p3219_p12 = scmp.ne.s32.totalorder %s3218_s20, 0 }
  0xd5   : > { %s509_s17 = scalar_lea.vmem [#allocation10], %s2878_s12 }
  0xd6   : > { %2388 = dma.done.wait (%p3219_p12), %s506_s1, 256  }
  0xd7   : > { %2390 = vsyncadd (%p3219_p12), %s506_s1, 4294967040  ;;  %s518_s8 = scalar_lea.vmem [#allocation12], %s2878_s12  ;;  %p3220_p2 = scmp.eq.s32.totalorder %s3216_s13, 0 }
  0xd9   : > { %2392 = dma.done.wait (%p3220_p2), [#allocation14], 32   ;;  %p3221_p7 = pmov %p3220_p2 }
  0xda   : > { %p3222_p11 = pmov %p3220_p2 }
  0xdb   : > { %2394 = vsyncadd (%p3221_p7), [#allocation14], 4294967264 }
  0xdc   : > { %2396 = dma.done.wait (%p3222_p11), [#allocation17], 272   ;;  %p3223_p10 = pmov %p3220_p2 }
  0xdd   : > { %p3224_p3 = pmov %p3220_p2 }
  0xde   : > { %2398 = vsyncadd (%p3223_p10), [#allocation17], 4294967024 }
  0xdf   : > { %2400 = dma.done.wait (%p3224_p3), [#allocation20], 272   ;;  %p3225_p6 = pmov %p3220_p2 }
  0xe0   : > { %s2898_s9 = scalar_lea.vmem [#allocation22], %s1673_s19  ;;  %s3226_s2 = sld [smem:[#allocation33_spill]] }
  0xe1   : > { %2402 = vsyncadd (%p3225_p6), [#allocation20], 4294967024 }
  0xe6   : > { %p1683_p9 = scmp.ne.s32.totalorder %s3226_s2, 0 }
  0xe8   : > { %597 = sbr.rel (%p1683_p9) target bundleno = 747 (0x2eb), region = 104 }
  0xed   : > { %v598_v0 = vld [vmem:[%s500_s30] sm:$0xff]  ;;  %vm601_vm0 = vcmask 261120   ;;  %vm767_vm1 = vcmask 31744   ;;  %v2470_v9 = vmov 0.0   ;;  %v2471_v10 = vmov -inf   ;;  %v2026_v12 = vld [vmem:[#allocation16] sm:$0xff]  }
  0xee   : > { %v602_v1 = vsel %vm601_vm0, %v598_v0, 0.0  ;;  %v2023_v7 = vld [vmem:[#allocation19 + $0x8] sm:$0xff]   ;;  %v2025_v8 = vld [vmem:[#allocation16 + $0x8] sm:$0xff]   ;;  %1747 = vmatprep.subr.bf16.mxu1 %v2470_v9  ;;  %768 = vst.msk [vmem:[#allocation4] sm:$0xff] %vm767_vm1, %v2471_v10  ;;  %769 = vst.msk [vmem:[#allocation5] sm:$0xff] %vm767_vm1, %v2470_v9  ;;  %1739 = vmatprep.subr.bf16.mxu0 %v2470_v9  ;;  %vm2472_vm2 = vmmov 0   ;;  %v699_v13 = vpack.c.bf16 %v598_v0, %v598_v0 }
  0xef   : > { %603 = vadd.xlane.f32.xlu0 %v602_v1  ;;  %770 = vst.msk [vmem:[#allocation6] sm:$0xff] %vm601_vm0, %v2470_v9  ;;  %1748 = vmatpush3.bf16.msra.mxu1 %v2023_v7  ;;  %v2024_v11 = vld [vmem:[#allocation19] sm:$0xff]   ;;  %v1684_v18 = vld [vmem:[#allocation13] ss:$0 sm:$0xff]  ;;  %v1685_v20 = vld [vmem:[#allocation15] ss:$0 sm:$0xff] }
  0xf0   : > { %1740 = vmatpush3.bf16.msra.mxu0 %v2025_v8  ;;  %1749 = vmatprep.subr.bf16.mxu1 %v2470_v9  ;;  %v1690_v24 = vld [vmem:[#allocation21] ss:$0 sm:$0xff]  ;;  %v1686_v30 = vld [vmem:[#allocation18] ss:$0 sm:$0xff] }
  0xf1   : > { %1751 = vmatprep.mubr.msk.bf16.mxu1 %vm2472_vm2, %v2470_v9  ;;  %1741 = vmatprep.subr.bf16.mxu0 %v2470_v9 }
  0xf2   : > { %1743 = vmatprep.mubr.msk.bf16.mxu0 %vm2472_vm2, %v2470_v9 }
  0xf3   : > { %1750 = vmatpush3.bf16.msra.mxu1 %v2024_v11 }
  0xf4   : > { %1742 = vmatpush3.bf16.msra.mxu0 %v2026_v12 }
  0xf6   : > { %1752 = vmatmul.mubr.msk.bf16.vlgmr.msra.gmra.mxu1 %vm601_vm0, %v699_v13 }
 0x178   : > { %v604_v2 = vpop.xlane.xlu0 %603 }
 0x179   : > { %v606_v3 = vmul.f32 0.03125, %v604_v2 }
 0x17b   : > { %v607_v4 = vsub.f32 %v598_v0, %v606_v3 }
 0x17d   : > { %v608_v5 = vmul.f32 %v607_v4, %v607_v4 }
 0x17f   : > { %v609_v6 = vsel %vm601_vm0, %v608_v5, 0.0 }
 0x180   : > { %610 = vadd.xlane.f32.xlu0 %v609_v6 }
 0x1b6   : > { %v760_v25 = vpop.f32.mrf.mxu1 }
 0x1b7   : > { %v761_v26 = vadd.f32 %v1690_v24, %v760_v25 }
 0x1b8   : > { %v1753_v27 = vpop.f32.mrf.mxu1 }
 0x1b9   : > { %766 = vst.msk [vmem:[#allocation3] sm:$0xff] %vm601_vm0, %v761_v26 }
 0x1ba   : > { %v763_v28 = vpop.f32.mrf.mxu1 }
 0x1bc   : > { %v1754_v29 = vpop.f32.mrf.mxu1 }
 0x209   : > { %v611_v14 = vpop.xlane.xlu0 %610 }
 0x20a   : > { %v612_v15 = vmul.f32 0.03125, %v611_v14 }
 0x20c   : > { %v613_v16 = vadd.f32 1e-05, %v612_v15 }
 0x20e   : > { %2027 = vrsqrt.f32 %v613_v16 }
 0x21b   : > { %v2028_v17 = vpop.eup %2027 }
 0x21c   : > { %v615_v19 = vmul.f32 %v2028_v17, %v607_v4 }
 0x21e   : > { %v622_v21 = vmul.f32 %v1684_v18, %v615_v19 }
 0x220   : > { %v629_v22 = vadd.f32 %v1685_v20, %v622_v21 }
 0x222   : > { %v630_v23 = vpack.c.bf16 %v629_v22, %v629_v22 }
 0x224   : > { %1744 = vmatmul.mubr.msk.bf16.vlgmr.msra.gmra.mxu0 %vm601_vm0, %v630_v23 }
 0x2e4   : > { %v691_v31 = vpop.f32.mrf.mxu0 }
 0x2e5   : > { %v692_v32 = vadd.f32 %v1686_v30, %v691_v31 }
 0x2e6   : > { %v1745_v33 = vpop.f32.mrf.mxu0 }
 0x2e7   : > { %v697_v34 = vmul.f32 0.17677669, %v692_v32 }
 0x2e8   : > { %v694_v35 = vpop.f32.mrf.mxu0 }
 0x2e9   : > { %698 = vst.msk [vmem:[#allocation2] sm:$0xff] %vm601_vm0, %v697_v34 }
 0x2ea   : > { %v1746_v36 = vpop.f32.mrf.mxu0 }
 0x2eb PF: > { %v2038_v37 = vld [vmem:[%s509_s17] sm:$0xff]   ;;  %v2473_v38 = vmov 0.0   ;;  %vm782_vm3 = vcmask 64512   ;;  %vm2474_vm4 = vmmov 0   ;;  %vm830_vm5 = vcmask 130048   ;;  %s2476_s4 = smov 120  }
 0x2ec   : > { %1755 = vmatprep.subr.bf16.mxu0 %v2473_v38  ;;  %1761 = vmatprep.subr.bf16.mxu1 %v2473_v38  ;;  %v787_v39 = vsel %vm782_vm3, %v2038_v37, 0  ;;  %v2475_v47 = vmov 0   ;;  %s2477_s16 = smov 112   ;;  %s2478_s26 = smov 104   ;;  %v2929_v48 = vld [vmem:[#allocation4] sm:$0xff]  ;;  %vm852_vm6 = vcmask 7168  }
 0x2ed   : > { %1757 = vmatprep.mubr.msk.bf16.mxu0 %vm2474_vm4, %v2473_v38  ;;  %1763 = vmatprep.mubr.msk.bf16.mxu1 %vm2474_vm4, %v2473_v38  ;;  %v2936_v52 = vld [vmem:[%s518_s8] sm:$0xff]   ;;  %v2479_v16 = vmov 1   ;;  %v2480_v23 = vmov 2   ;;  %vm989_vm7 = vcmask 15368   ;;  %v2481_v30 = vmov 3   ;;  %s2482_s11 = smov 8  }
 0x2ee   : > { %1756 = vmatpush3.bf16.xpose.msra.mxu0 %v787_v39  ;;  %2029 = vset.pattern.permute.xlu0 %v2475_v47  ;;  %vm1128_vm8 = vcmask 23568   ;;  %vm1267_vm9 = vcmask 31768   ;;  %s2483_s25 = smov 16   ;;  %s2484_s23 = smov 24   ;;  %vm1050_vm10 = vcmask 130112   ;;  %vm1189_vm11 = vcmask 195712  }
 0x2ef   : > { %1773 = vmatprep.subr.bf16.mxu0 %v2473_v38  ;;  %919 = vrot.lane.b32.xlu1 %v2038_v37, %s2476_s4  ;;  %vm1328_vm12 = vcmask 261312   ;;  %s3227_s7 = sld [smem:[#allocation33_spill]] }
 0x2f0   : > { %v775_v40 = vld [vmem:[#allocation2] sm:$0xff]  ;;  %1762 = vmatpush3.bf16.msra.mxu1 %v2936_v52  ;;  %2030 = vset.pattern.permute.xlu1 %v2479_v16 }
 0x2f1   : > { %v776_v41 = vpack.c.bf16 %v775_v40, %v775_v40  ;;  %1767 = vmatprep.subr.bf16.mxu1 %v2473_v38 }
 0x2f3   : > { %917 = vrot.lane.b32.xlu1 %v776_v41, %s2476_s4 }
 0x2f5   : > { %1758 = vmatmul.mubr.msk.bf16.vlgmr.msra.gmra.mxu0 %vm782_vm3, %v776_v41  ;;  %p1704_p8 = scmp.ne.s32.totalorder %s3227_s7, 1 }
 0x2f6   : > { %1775 = vmatprep.mubr.msk.bf16.mxu0 %vm2474_vm4, %v2473_v38  ;;  %s3228_s19 = sld [smem:[#allocation53_spill]] (!%p1704_p8) }
 0x2f7   : > { %1058 = vrot.lane.b32.xlu1 %v2038_v37, %s2477_s16  ;;  %s3230_s0 = sld [smem:[#allocation54_spill]] (!%p1704_p8) }
 0x2fb   : > { %1056 = vrot.lane.b32.xlu1 %v776_v41, %s2477_s16 }
 0x2fc   : > { %s3229_s30 = smov (!%p1704_p8), %s3228_s19 }
 0x2ff   : > { %1197 = vrot.lane.b32.xlu1 %v2038_v37, %s2478_s26 }
 0x303   : > { %1195 = vrot.lane.b32.xlu1 %v776_v41, %s2478_s26 }
 0x361   : > { %v920_v56 = vpop.permute.xlu1 %919 }
 0x362   : > { %v925_v59 = vsel %vm782_vm3, %v920_v56, 0 }
 0x365   : > { %v918_v57 = vpop.permute.xlu1 %917 }
 0x369   : > { %v1059_v61 = vpop.permute.xlu1 %1058 }
 0x36a   : > { %v1064_v63 = vsel %vm782_vm3, %v1059_v61, 0 }
 0x36d   : > { %v1057_v62 = vpop.permute.xlu1 %1056 }
 0x371   : > { %v1198_v0 = vpop.permute.xlu1 %1197 }
 0x372   : > { %v1203_v1 = vsel %vm782_vm3, %v1198_v0, 0 }
 0x375   : > { %v1196_v2 = vpop.permute.xlu1 %1195 }
 0x3b5   : > { %v823_v42 = vpop.f32.mrf.mxu0 }
 0x3b6   : > { %v831_v43 = vsel %vm830_vm5, %v823_v42, -inf }
 0x3b7   : > { %832 = vmax.xlane.f32.xlu0 %v831_v43  ;;  %v1759_v44 = vpop.f32.mrf.mxu0 }
 0x3b9   : > { %v826_v45 = vpop.f32.mrf.mxu0 }
 0x3bb   : > { %v1760_v46 = vpop.f32.mrf.mxu0 }
 0x440   : > { %v833_v49 = vpop.xlane.xlu0 %832 }
 0x441   : > { %v834_v50 = vmax.f32 %v2929_v48, %v833_v49 }
 0x443   : > { %v835_v51 = vsub.f32 %v2929_v48, %v834_v50  ;;  %913 = vst.msk [vmem:[#allocation4] sm:$0xff] %vm852_vm6, %v834_v50  ;;  %840 = vperm.xlu0 %2029, %v834_v50   ;;  %v854_v50 = vld [vmem:[#allocation6] sm:$0xff] }
 0x445   : > { %v836_v24 = vmul.f32 1.442695, %v835_v51 }
 0x447   : > { %2031 = vset.pattern.permute.xlu0 %v2480_v23 }
 0x44a   : > { %v967_v26 = vld [vmem:[#allocation4] sm:$0xff] }
 0x4be   : > { %v841_v53 = vpop.permute.xlu0 %840 }
 0x4bf   : > { %v843_v54 = vsub.f32 %v823_v42, %v841_v53 }
 0x4c1   : > { %v844_v55 = vmul.f32 1.442695, %v843_v54 }
 0x4c3   : > { %2040 = vpow2.f32 %v844_v55 }
 0x4c4   : > { %2042 = vpow2.f32 %v836_v24 }
 0x4d0   : > { %v2940_v58 = vpop.eup %2040 }
 0x4d1   : > { %v861_v60 = vpack.c.bf16 %v2940_v58, %v2940_v58  ;;  %v2978_v34 = vpop.eup %2042  ;;  %v848_v41 = vsel %vm830_vm5, %v2940_v58, 0.0 }
 0x4d3   : > { %1764 = vmatmul.mubr.msk.bf16.vlgmr.msra.gmra.mxu1 %vm830_vm5, %v861_v60 }
 0x4d4   : > { %1768 = vmatpush3.bf16.xpose.msra.mxu1 %v925_v59  ;;  %1769 = vmatprep.mubr.msk.bf16.mxu1 %vm2474_vm4, %v2473_v38 }
 0x4d5   : > { %1779 = vmatprep.subr.bf16.mxu1 %v2473_v38 }
 0x4db   : > { %1770 = vmatmul.mubr.msk.bf16.vlgmr.msra.gmra.mxu1 %vm782_vm3, %v918_v57 }
 0x4dc   : > { %1780 = vmatpush3.bf16.xpose.msra.mxu1 %v1064_v63  ;;  %1781 = vmatprep.mubr.msk.bf16.mxu1 %vm2474_vm4, %v2473_v38 }
 0x4dd   : > { %1791 = vmatprep.subr.bf16.mxu1 %v2473_v38 }
 0x4e3   : > { %1782 = vmatmul.mubr.msk.bf16.vlgmr.msra.gmra.mxu1 %vm782_vm3, %v1057_v62 }
 0x4e4   : > { %1792 = vmatpush3.bf16.xpose.msra.mxu1 %v1203_v1  ;;  %1793 = vmatprep.mubr.msk.bf16.mxu1 %vm2474_vm4, %v2473_v38 }
 0x4eb   : > { %1794 = vmatmul.mubr.msk.bf16.vlgmr.msra.gmra.mxu1 %vm782_vm3, %v1196_v2 }
 0x593   : > { %v2959_v3 = vpop.f32.mrf.mxu1 }
 0x595   : > { %v1765_v4 = vpop.f32.mrf.mxu1 }
 0x597   : > { %v908_v5 = vpop.f32.mrf.mxu1 }
 0x598   : > { %v846_v5 = vld [vmem:[#allocation5] sm:$0xff] }
 0x599   : > { %v1766_v6 = vpop.f32.mrf.mxu1 }
 0x59a   : > { %v847_v6 = vmul.f32 %v2978_v34, %v846_v5 }
 0x59b   : > { %v2961_v7 = vpop.f32.mrf.mxu1 }
 0x59c   : > { %v968_v8 = vsel %vm830_vm5, %v2961_v7, -inf }
 0x59d   : > { %969 = vmax.xlane.f32.xlu1 %v968_v8  ;;  %v1771_v9 = vpop.f32.mrf.mxu1 }
 0x59f   : > { %v964_v10 = vpop.f32.mrf.mxu1 }
 0x5a1   : > { %v1772_v11 = vpop.f32.mrf.mxu1 }
 0x5a3   : > { %v2965_v12 = vpop.f32.mrf.mxu1 }
 0x5a4   : > { %v1107_v13 = vsel %vm830_vm5, %v2965_v12, -inf }
 0x5a5   : > { %1108 = vmax.xlane.f32.xlu0 %v1107_v13  ;;  %v1783_v14 = vpop.f32.mrf.mxu1 }
 0x5a7   : > { %v1103_v15 = vpop.f32.mrf.mxu1 }
 0x5a9   : > { %v1784_v17 = vpop.f32.mrf.mxu1 }
 0x5ab   : > { %v2969_v18 = vpop.f32.mrf.mxu1 }
 0x5ac   : > { %v1246_v19 = vsel %vm830_vm5, %v2969_v18, -inf }
 0x5ad   : > { %1247 = vmax.xlane.f32.xlu1 %v1246_v19  ;;  %v1795_v20 = vpop.f32.mrf.mxu1 }
 0x5af   : > { %v1242_v21 = vpop.f32.mrf.mxu1 }
 0x5b1   : > { %v1796_v22 = vpop.f32.mrf.mxu1 }
 0x626   : > { %v970_v25 = vpop.xlane.xlu1 %969 }
 0x627   : > { %v971_v27 = vmax.f32 %v967_v26, %v970_v25 }
 0x629   : > { %v972_v28 = vsub.f32 %v967_v26, %v971_v27  ;;  %1052 = vst.msk [vmem:[#allocation4] sm:$0xff] %vm989_vm7, %v971_v27  ;;  %977 = vperm.xlu1 %2030, %v971_v27  }
 0x62b   : > { %v973_v40 = vmul.f32 1.442695, %v972_v28 }
 0x62d   : > { %999 = vrot.lane.b32.xlu1 %v2936_v52, %s2476_s4  ;;  %2044 = vpow2.f32 %v973_v40 }
 0x62e   : > { %v1109_v29 = vpop.xlane.xlu0 %1108  ;;  %2032 = vset.pattern.permute.xlu1 %v2481_v30 }
 0x630   : > { %v1106_v31 = vld [vmem:[#allocation4] sm:$0xff] }
 0x631   : > { %v1110_v32 = vmax.f32 %v1106_v31, %v1109_v29 }
 0x633   : > { %v1111_v33 = vsub.f32 %v1106_v31, %v1110_v32  ;;  %1191 = vst.msk [vmem:[#allocation4] sm:$0xff] %vm1128_vm8, %v1110_v32  ;;  %1116 = vperm.xlu0 %2031, %v1110_v32  }
 0x635   : > { %v1112_v60 = vmul.f32 1.442695, %v1111_v33 }
 0x636   : > { %v1248_v35 = vpop.xlane.xlu1 %1247 }
 0x637   : > { %2033 = vset.pattern.permute.xlu0 %v2475_v47 }
 0x638   : > { %857 = vperm.xlu0 %2033, %v2978_v34  }
 0x63a   : > { %v2982_v36 = vld [vmem:[#allocation4] sm:$0xff]  ;;  %v2045_v42 = vpop.eup %2044 }
 0x63b   : > { %v2985_v37 = vmax.f32 %v2982_v36, %v1248_v35 }
 0x63c   : > { %2035 = vset.pattern.permute.xlu0 %v2480_v23 }
 0x63d   : > { %v1250_v39 = vsub.f32 %v2982_v36, %v2985_v37  ;;  %1330 = vst.msk [vmem:[#allocation4] sm:$0xff] %vm1267_vm9, %v2985_v37  ;;  %1255 = vperm.xlu1 %2032, %v2985_v37  }
 0x63f   : > { %v1251_v25 = vmul.f32 1.442695, %v1250_v39 }
 0x641   : > { %1138 = vrot.lane.b32.xlu1 %v2936_v52, %s2477_s16 }
 0x642   : > { %2034 = vset.pattern.permute.xlu1 %v2479_v16 }
 0x645   : > { %1277 = vrot.lane.b32.xlu1 %v2936_v52, %s2478_s26 }
 0x669   : > { %849 = vadd.xlane.f32.xlu1 %v848_v41 }
 0x67a   : > { %994 = vperm.xlu1 %2034, %v2045_v42  }
 0x67e   : > { %2036 = vset.pattern.permute.xlu1 %v2481_v30 }
 0x6a4   : > { %v978_v43 = vpop.permute.xlu1 %977 }
 0x6a5   : > { %v980_v44 = vsub.f32 %v2961_v7, %v978_v43 }
 0x6a7   : > { %v981_v45 = vmul.f32 1.442695, %v980_v44 }
 0x6a8   : > { %v1000_v46 = vpop.permute.xlu1 %999 }
 0x6a9   : > { %2046 = vpow2.f32 %v981_v45  ;;  %1774 = vmatpush3.bf16.msra.mxu0 %v1000_v46 }
 0x6aa   : > { %1785 = vmatprep.subr.bf16.mxu0 %v2473_v38 }
 0x6ae   : > { %v1117_v47 = vpop.permute.xlu0 %1116 }
 0x6af   : > { %v1119_v48 = vsub.f32 %v2965_v12, %v1117_v47 }
 0x6b1   : > { %v1120_v49 = vmul.f32 1.442695, %v1119_v48 }
 0x6b3   : > { %2048 = vpow2.f32 %v1120_v49  ;;  %v858_v51 = vpop.permute.xlu0 %857 }
 0x6b4   : > { %v860_v52 = vmul.f32 %v858_v51, %v854_v50 }
 0x6b6   : > { %v2047_v53 = vpop.eup %2046  ;;  %v911_v54 = vadd.f32 %v2959_v3, %v860_v52 }
 0x6b7   : > { %v985_v55 = vsel %vm830_vm5, %v2047_v53, 0.0  ;;  %v998_v56 = vpack.c.bf16 %v2047_v53, %v2047_v53 }
 0x6b8   : > { %912 = vst.msk [vmem:[#allocation6] sm:$0xff] %vm782_vm3, %v911_v54  ;;  %v1256_v57 = vpop.permute.xlu1 %1255  ;;  %986 = vadd.xlane.f32.xlu0 %v985_v55 }
 0x6b9   : > { %v1258_v58 = vsub.f32 %v2969_v18, %v1256_v57  ;;  %1776 = vmatmul.mubr.msk.bf16.vlgmr.msra.gmra.mxu0 %vm830_vm5, %v998_v56 }
 0x6ba   : > { %1787 = vmatprep.mubr.msk.bf16.mxu0 %vm2474_vm4, %v2473_v38 }
 0x6bb   : > { %v1259_v59 = vmul.f32 1.442695, %v1258_v58 }
 0x6bc   : > { %v1139_v61 = vpop.permute.xlu1 %1138 }
 0x6bd   : > { %2050 = vpow2.f32 %v1259_v59  ;;  %1786 = vmatpush3.bf16.msra.mxu0 %v1139_v61 }
 0x6be   : > { %1797 = vmatprep.subr.bf16.mxu0 %v2473_v38  ;;  %2052 = vpow2.f32 %v1112_v60 }
 0x6bf   : > { %2054 = vpow2.f32 %v1251_v25  ;;  %v991_v28 = vld [vmem:[#allocation6] sm:$0xff] }
 0x6c0   : > { %v2049_v62 = vpop.eup %2048  ;;  %v1278_v0 = vpop.permute.xlu1 %1277 }
 0x6c1   : > { %v1137_v63 = vpack.c.bf16 %v2049_v62, %v2049_v62  ;;  %v1124_v24 = vsel %vm830_vm5, %v2049_v62, 0.0 }
 0x6c3   : > { %1788 = vmatmul.mubr.msk.bf16.vlgmr.msra.gmra.mxu0 %vm830_vm5, %v1137_v63 }
 0x6c4   : > { %1798 = vmatpush3.bf16.msra.mxu0 %v1278_v0  ;;  %1799 = vmatprep.mubr.msk.bf16.mxu0 %vm2474_vm4, %v2473_v38 }
 0x6ca   : > { %v2051_v1 = vpop.eup %2050 }
 0x6cb   : > { %v1276_v2 = vpack.c.bf16 %v2051_v1, %v2051_v1  ;;  %v2053_v3 = vpop.eup %2052  ;;  %v1263_v4 = vsel %vm830_vm5, %v2051_v1, 0.0 }
 0x6cc   : > { %v2055_v26 = vpop.eup %2054 }
 0x6cd   : > { %1800 = vmatmul.mubr.msk.bf16.vlgmr.msra.gmra.mxu0 %vm830_vm5, %v1276_v2 }
 0x6ce   : > { %1133 = vperm.xlu0 %2035, %v2053_v3  }
 0x6d2   : > { %2037 = vset.pattern.permute.xlu0 %v2481_v30 }
 0x6ed   : > { %1264 = vadd.xlane.f32.xlu0 %v1263_v4 }
 0x6f2   : > { %v850_v7 = vpop.xlane.xlu1 %849 }
 0x6f3   : > { %v851_v8 = vadd.f32 %v850_v7, %v847_v6 }
 0x6f5   : > { %853 = vst.msk [vmem:[#allocation5] sm:$0xff] %vm852_vm6, %v851_v8 }
 0x6f6   : > { %v995_v27 = vpop.permute.xlu1 %994 }
 0x6f7   : > { %v997_v29 = vmul.f32 %v995_v27, %v991_v28 }
 0x6fc   : > { %v983_v9 = vld [vmem:[#allocation5] sm:$0xff] }
 0x6fd   : > { %v984_v38 = vmul.f32 %v2045_v42, %v983_v9 }
 0x741   : > { %v987_v10 = vpop.xlane.xlu0 %986 }
 0x742   : > { %v988_v11 = vadd.f32 %v987_v10, %v984_v38 }
 0x744   : > { %990 = vst.msk [vmem:[#allocation5] sm:$0xff] %vm989_vm7, %v988_v11 }
 0x749   : > { %v1134_v37 = vpop.permute.xlu0 %1133 }
 0x74b   : > { %v1122_v32 = vld [vmem:[#allocation5] sm:$0xff] }
 0x74c   : > { %v1123_v33 = vmul.f32 %v2053_v3, %v1122_v32 }
 0x776   : > { %v1265_v45 = vpop.xlane.xlu0 %1264 }
 0x779   : > { %v1039_v12 = vpop.f32.mrf.mxu0 }
 0x77a   : > { %1046 = vrot.lane.b32.xlu1 %v1039_v12, %s2482_s11 }
 0x77b   : > { %v1777_v13 = vpop.f32.mrf.mxu0 }
 0x77d   : > { %v1042_v14 = vpop.f32.mrf.mxu0 }
 0x77f   : > { %v1778_v15 = vpop.f32.mrf.mxu0 }
 0x783   : > { %v1178_v16 = vpop.f32.mrf.mxu0 }
 0x785   : > { %v1789_v17 = vpop.f32.mrf.mxu0 }
 0x787   : > { %v1181_v18 = vpop.f32.mrf.mxu0 }
 0x789   : > { %v1790_v19 = vpop.f32.mrf.mxu0 }
 0x78d   : > { %v1317_v20 = vpop.f32.mrf.mxu0 }
 0x78f   : > { %v1801_v21 = vpop.f32.mrf.mxu0 }
 0x791   : > { %v1320_v22 = vpop.f32.mrf.mxu0 }
 0x793   : > { %v1802_v23 = vpop.f32.mrf.mxu0 }
 0x79e   : > { %1125 = vadd.xlane.f32.xlu1 %v1124_v24 }
 0x7af   : > { %1185 = vrot.lane.b32.xlu1 %v1178_v16, %s2483_s25 }
 0x7b3   : > { %1272 = vperm.xlu1 %2036, %v2055_v26  }
 0x7b7   : > { %1324 = vrot.lane.b32.xlu1 %v1317_v20, %s2484_s23 }
 0x7ec   : > { %v1047_v30 = vpop.permute.xlu1 %1046 }
 0x7ed   : > { %v1049_v31 = vadd.f32 %v1047_v30, %v997_v29 }
 0x7ef   : > { %1051 = vst.msk [vmem:[#allocation6] sm:$0xff] %vm1050_vm10, %v1049_v31 }
 0x7f6   : > { %v1130_v35 = vld [vmem:[#allocation6] sm:$0xff] }
 0x7f7   : > { %v1136_v39 = vmul.f32 %v1134_v37, %v1130_v35 }
 0x827   : > { %v1126_v34 = vpop.xlane.xlu1 %1125 }
 0x828   : > { %v1127_v36 = vadd.f32 %v1126_v34, %v1123_v33 }
 0x82a   : > { %1129 = vst.msk [vmem:[#allocation5] sm:$0xff] %vm1128_vm8, %v1127_v36 }
 0x82b   : > { %v1186_v40 = vpop.permute.xlu1 %1185 }
 0x82c   : > { %v1188_v41 = vadd.f32 %v1186_v40, %v1136_v39 }
 0x82e   : > { %1190 = vst.msk [vmem:[#allocation6] sm:$0xff] %vm1189_vm11, %v1188_v41 }
 0x82f   : > { %v1273_v43 = vpop.permute.xlu1 %1272 }
 0x831   : > { %v1261_v42 = vld [vmem:[#allocation5] sm:$0xff] }
 0x832   : > { %v1262_v44 = vmul.f32 %v2055_v26, %v1261_v42 }
 0x833   : > { %v1325_v49 = vpop.permute.xlu1 %1324 }
 0x834   : > { %v1266_v46 = vadd.f32 %v1265_v45, %v1262_v44 }
 0x835   : > { %v1269_v47 = vld [vmem:[#allocation6] sm:$0xff] }
 0x836   : > { %1268 = vst.msk [vmem:[#allocation5] sm:$0xff] %vm1267_vm9, %v1266_v46  ;;  %v1275_v48 = vmul.f32 %v1273_v43, %v1269_v47  ;;  %1334 = sbr.rel (%p1704_p8) target bundleno = 2489 (0x9b9), region = 108 }
 0x838   : > { %v1327_v50 = vadd.f32 %v1325_v49, %v1275_v48 }
 0x83a   : > { %1329 = vst.msk [vmem:[#allocation6] sm:$0xff] %vm1328_vm12, %v1327_v50 }
 0x83b   : > { %v2485_v52 = vmov 0   ;;  %v2486_v53 = vmov 2   ;;  %v2487_v55 = vmov 1   ;;  %v2488_v56 = vmov 3   ;;  %v2061_v57 = vld [vmem:[%s3228_s19 + $0x8] sm:$0xff]   ;;  %v2062_v59 = vld [vmem:[%s3229_s30] sm:$0xff]  }
 0x83c   : > { %2056 = vset.pattern.permute.xlu0 %v2485_v52  ;;  %2058 = vset.pattern.permute.xlu1 %v2486_v53  ;;  %v2489_v58 = vmov 0.0   ;;  %vm2490_vm13 = vmmov 0   ;;  %vm1391_vm14 = vcmask 261120   ;;  %v1705_v38 = vld [vmem:[%s3230_s0] ss:$0 sm:$0xff]  ;;  %v1435_v11 = vld [vmem:[#allocation3] sm:$0xff] }
 0x83d   : > { %v1335_v51 = vld [vmem:[#allocation5] sm:$0xff]  ;;  %1803 = vmatprep.subr.bf16.mxu0 %v2489_v58  ;;  %1807 = vmatprep.mubr.msk.bf16.mxu0 %vm2490_vm13, %v2489_v58 }
 0x83e   : > { %2063 = vrcp.f32 %v1335_v51  ;;  %1804 = vmatpush3.bf16.msra.mxu0 %v2061_v57 }
 0x83f   : > { %1805 = vmatprep.subr.bf16.mxu0 %v2489_v58 }
 0x841   : > { %v1337_v60 = vld [vmem:[#allocation6] sm:$0xff] }
 0x842   : > { %1806 = vmatpush3.bf16.msra.mxu0 %v2062_v59 }
 0x84b   : > { %v2064_v54 = vpop.eup %2063 }
 0x84c   : > { %1340 = vperm.xlu0 %2056, %v2064_v54   ;;  %1354 = vperm.xlu1 %2058, %v2064_v54  }
 0x850   : > { %2057 = vset.pattern.permute.xlu0 %v2487_v55  ;;  %2059 = vset.pattern.permute.xlu1 %v2488_v56 }
 0x851   : > { %1347 = vperm.xlu0 %2057, %v2064_v54   ;;  %1361 = vperm.xlu1 %2059, %v2064_v54  }
 0x855   : > { %2060 = vset.pattern.permute.xlu0 %v2488_v56 }
 0x8c7   : > { %v1341_v61 = vpop.permute.xlu0 %1340  ;;  %v1355_v2 = vpop.permute.xlu1 %1354 }
 0x8c8   : > { %v1343_v62 = vmul.f32 %v1341_v61, %v1337_v60 }
 0x8ca   : > { %1344 = vst.msk [vmem:[#allocation6] sm:$0xff] %vm782_vm3, %v1343_v62 }
 0x8cc   : > { %v1348_v63 = vpop.permute.xlu0 %1347  ;;  %v1362_v5 = vpop.permute.xlu1 %1361 }
 0x8d1   : > { %v1345_v0 = vld [vmem:[#allocation6] sm:$0xff] }
 0x8d2   : > { %v1350_v1 = vmul.f32 %v1348_v63, %v1345_v0 }
 0x8d4   : > { %1351 = vst.msk [vmem:[#allocation6] sm:$0xff] %vm1050_vm10, %v1350_v1 }
 0x8db   : > { %v1352_v3 = vld [vmem:[#allocation6] sm:$0xff] }
 0x8dc   : > { %v1357_v4 = vmul.f32 %v1355_v2, %v1352_v3 }
 0x8de   : > { %1358 = vst.msk [vmem:[#allocation6] sm:$0xff] %vm1189_vm11, %v1357_v4 }
 0x8e5   : > { %v1359_v6 = vld [vmem:[#allocation6] sm:$0xff] }
 0x8e6   : > { %v1364_v7 = vmul.f32 %v1362_v5, %v1359_v6 }
 0x8e8   : > { %1365 = vst.msk [vmem:[#allocation6] sm:$0xff] %vm1328_vm12, %v1364_v7 }
 0x8ef   : > { %v1366_v8 = vld [vmem:[#allocation6] sm:$0xff] }
 0x8f0   : > { %v1367_v9 = vpack.c.bf16 %v1366_v8, %v1366_v8 }
 0x8f2   : > { %1808 = vmatmul.mubr.msk.bf16.vlgmr.msra.gmra.mxu0 %vm1391_vm14, %v1367_v9 }
 0x9b2   : > { %v1429_v10 = vpop.f32.mrf.mxu0 }
 0x9b3   : > { %v1430_v12 = vadd.f32 %v1705_v38, %v1429_v10 }
 0x9b4   : > { %v1809_v13 = vpop.f32.mrf.mxu0 }
 0x9b5   : > { %v1436_v14 = vadd.f32 %v1435_v11, %v1430_v12 }
 0x9b6   : > { %v1432_v15 = vpop.f32.mrf.mxu0 }
 0x9b7   : > { %1437 = vst.msk [vmem:[%s2898_s9] sm:$0xff] %vm1391_vm14, %v1436_v14 }
 0x9b8   : > { %v1810_v16 = vpop.f32.mrf.mxu0 }
 0x9b9 PF: > { %s3231_s21 = sld [smem:[#allocation35_spill]]  ;;  %s1454_s8 = sshll.u32 %s2898_s9, 4  ;;  %s1455_s8 = int_to_ptr.vmem [resolvable:$true] %s1454_s8 }
 0x9ba   : > { %s3232_s12 = sld [smem:[#allocation34_spill]]  ;;  %s1439_s23 = scalar_lea.sflag [#allocation9], %s2868_s18 }
 0x9bb   : > { %s3233_s26 = sld [smem:[#allocation55_spill]]  ;;  %s2305_s7 = scalar_lea.vmem %s1455_s8, 128 }
 0x9bc   : > { %p2306_p1 = scmp.ne.s32.totalorder %s1455_s8, %s2305_s7  ;;  %s2491_s3 = smov [#allocation22]  }
 0x9bd   : > { %s2309_s5 = sshll.u32 %s2491_s3, 4  ;;  %s2310_s5 = int_to_ptr.vmem [resolvable:$false] %s2309_s5 }
 0x9be   : > { %p2307_p0 = pnand %p2306_p1, %p2791_p13  ;;  %s2311_s19 = scalar_lea.vmem %s2310_s5, 256 }
 0x9bf   : > { %s1710_s1 = sshll.u32 %s3231_s21, 1  ;;  %p2312_p5 = scmp.lt.s32.totalorder %s1455_s8, %s2310_s5 }
 0x9c0   : > { %s1450_s17 = sadd.s32 %s3232_s12, %s1710_s1  ;;  %p2308_p4 = pneg %p2307_p0 }
 0x9c1   : > { %s1711_s2 = sshll.u32 %s1450_s17, 7  ;;  %s3234_s11 = smov %s3233_s26 }
 0x9c2   : > { %s1452_s25 = scalar_lea.hbm %s3233_s26, %s1711_s2  ;;  %p2313_p12 = scmp.lt.s32.totalorder %s2311_s19, %s2305_s7 }
 0x9c4   : > { %p2314_p2 = por %p2313_p12, %p2312_p5 }
 0x9c6   : > { %p2315_p7 = pnand %p2314_p2, %p2308_p4 }
 0x9c8   : > { %2318 = shalt.err (!%p2315_p7)
}
 0x9c9   : > { %s2319_s9 = scalar_lea.hbm %s1452_s25, 128  ;;  %s2323_s13 = scalar_lea.hbm %s3234_s11, 512 }
 0x9ca   : > { %p2320_p11 = scmp.ne.s32.totalorder %s1452_s25, %s2319_s9  ;;  %p2324_p6 = scmp.lt.s32.totalorder %s1452_s25, %s3234_s11 }
 0x9cb   : > { %p2325_p9 = scmp.lt.s32.totalorder %s2323_s13, %s2319_s9 }
 0x9cc   : > { %p2321_p10 = pnand %p2320_p11, %p2791_p13 }
 0x9cd   : > { %p2326_p8 = por %p2325_p9, %p2324_p6 }
 0x9ce   : > { %p2322_p3 = pneg %p2321_p10 }
 0x9d0   : > { %p2327_p1 = pnand %p2326_p8, %p2322_p3 }
 0x9d2   : > { %2330 = shalt.err (!%p2327_p1)
}
 0x9d3   : > { %1841 = dma.vmem_to_hbm [thread:$0]  (%p2791_p13), %s1455_s8, 128, %s1452_s25, %s1439_s23  }
 0x9d4 PF: > { %s3235_s0 = sld [smem:[#allocation31_spill]]  ;;  %p1889_p0 = scmp.ge.s32.totalorder %s2457_s29, 2 }
 0x9d5   : > { %s3236_s21 = sld [smem:[#allocation43_spill]] }
 0x9da   : > { %s1466_s12 = sand.u32 1, %s3235_s0  }
 0x9db   : > { %p3237_p4 = scmp.ne.s32.totalorder %s3236_s21, 0  ;;  %s1467_s1 = scalar_lea.sflag [#allocation9], %s1466_s12 }
 0x9dd   : > { %p1873_p5 = pnand %p1889_p0, %p3237_p4 }
 0x9df   : > { %p1874_p12 = pneg %p1873_p5 }
 0x9e1   : > { %2404 = dma.done.wait (%p1874_p12), %s1467_s1, 128  }
 0x9e2   : > { %2406 = vsyncadd (%p1874_p12), %s1467_s1, 4294967168  ;;  %s33_s29 = sadd.s32 1, %s2457_s29   ;;  %s3239_s15 = sld [smem:[#allocation29_spill]] }
 0x9e3   : > { %p3067_p2 = scmp.ge.s32.totalorder %s33_s29, 10   ;;  %s3240_s18 = sld [smem:[#allocation30_spill]] }
 0x9e4   : > { %s3241_s20 = sld [smem:[#allocation32_spill]]  ;;  %s3248_s19 = smov %s3266_s14 }
 0x9e5   : > { %s3242_s23 = sld [smem:[#allocation36_spill]]  ;;  %s3249_s21 = smov %s2429_s22 }
 0x9e6   : > { %s3243_s26 = sld [smem:[#allocation39_spill]]  ;;  %s3250_s22 = smov %s2817_s6 }
 0x9e7   : > { %s3244_s8 = sld [smem:[#allocation41_spill]]  ;;  %s3251_s24 = smov %s2449_s27 }
 0x9e8   : > { %s3245_s2 = sld [smem:[#allocation42_spill]]  ;;  %s3247_s17 = smov %s3239_s15 }
 0x9e9   : > { %s3252_s25 = smov %s2453_s28 }
 0x9ea   :  { %32 = sbr.rel (!%p3067_p2) target bundleno = 28 (0x1c), region = 165 }
 0x9ed   : > { %s3253_s27 = smov %s3244_s8 }
 0x9ee   : > { %s3254_s28 = smov %s3245_s2 }
 0x9ef   :  { %1472 = vsyncpa [#allocation8], 1 }
 0x9f0   :  { %1474 = vsyncpa [#allocation8 + $0x1], 1 }
 0x9f1   :  { %1475 = vsyncpa [#allocation11], 1 }
 0x9f2   :  { %1477 = vsyncpa [#allocation11 + $0x1], 1 }
 0x9f3   :  { %1478 = vsyncpa [#allocation14], 1 }
 0x9f4   :  { %1479 = vsyncpa [#allocation17], 1 }
 0x9f5   :  { %1480 = vsyncpa [#allocation20], 1 }
 0x9f6   :  { %1481 = vsyncpa [#allocation9], 1 }
 0x9f7   :  { %1483 = vsyncpa [#allocation9 + $0x1], 1 }

</bundles_post_ra>
